<compile_context>
chip_gen: v7x
topology: tpu7x:2x2x1
jax: 0.10.0
libtpu: 0.0.40
codegen_flags: <defaults>
</compile_context>

<pallas_src>
import jax
import jax.numpy as jnp
from jax import lax
from jax.experimental import pallas as pl
from jax.experimental.pallas import tpu as pltpu


def decoder_kernel(e_ref, h0_ref, c0_ref,
                   wih_t_ref, whh_t_ref, b_ref,
                   wout_t_ref, bout_ref,
                   out_ref, so_ref, hN_ref, cN_ref,
                   xproj_sc):
    """Single-invocation LSTM decoder (all shapes pre-padded in the wrapper).

    e_ref     : (T*B, E)   embedded inputs, row t*B+b is (time t, batch b)
    h0/c0     : (B, H)     initial recurrent state
    wih_t_ref : (E, 4H)    W_ih^T, gate order [i, f, o, g]
    whh_t_ref : (H, 4H)    W_hh^T, gate order [i, f, o, g]
    b_ref     : (1, 4H)    b_ih + b_hh (pre-summed, reordered)
    wout_t_ref: (H, O)     W_out^T
    bout_ref  : (1, O)     b_out (padded lanes = -1e30)
    out_ref   : (T, B, H)  all hidden states
    so_ref    : (B, O)     log_softmax(linear(out[0]))
    hN/cN_ref : (B, H)     final recurrent state
    xproj_sc  : (T*B, 4H)  VMEM scratch for the hoisted input projection
    """
    T, B, H = out_ref.shape        # B = multiple of 8, H = multiple of 128

    # --- Hoisted input projection: one big MXU matmul, bias folded in. ------
    xproj_sc[...] = (
        jnp.dot(e_ref[...], wih_t_ref[...], preferred_element_type=jnp.float32)
        + b_ref[...]
    )

    whh_t = whh_t_ref[...]         # (H, 4H), resident across the recurrence

    def lstm_cell(x_t, h, c):
        # x_t: (B, 4H) pre-projected input; h, c: (B, H)
        gates = x_t + jnp.dot(h, whh_t, preferred_element_type=jnp.float32)
        # Gate order [i, f, o | g]: one sigmoid EUP pass over 3H lanes,
        # one tanh over H lanes (all slices 128-lane aligned).
        sg = jax.nn.sigmoid(gates[:, :3 * H])
        g_g = jnp.tanh(gates[:, 3 * H:])
        i_g = sg[:, :H]
        f_g = sg[:, H:2 * H]
        o_g = sg[:, 2 * H:]
        c_new = f_g * c + i_g * g_g
        h_new = o_g * jnp.tanh(c_new)
        return h_new, c_new

    # --- Step 0 peeled: the output head depends only on this carry, so it
    # --- can be scheduled under the remaining serial steps. -----------------
    h1, c1 = lstm_cell(xproj_sc[0:B, :], h0_ref[...], c0_ref[...])
    out_ref[0] = h1.astype(out_ref.dtype)

    # Linear + LogSoftmax(dim=1) on the first time step (as in PyTorch).
    logits = (jnp.dot(h1, wout_t_ref[...], preferred_element_type=jnp.float32)
              + bout_ref[...])
    m = jnp.max(logits, axis=1, keepdims=True)
    lse = jnp.log(jnp.sum(jnp.exp(logits - m), axis=1, keepdims=True)) + m
    so_ref[...] = (logits - lse).astype(so_ref.dtype)

    # --- Remaining steps: only h @ W_hh^T + gates on the critical path. -----
    def step(t, carry):
        h, c = carry
        # B is a multiple of the f32 sublane tile (8) -> aligned slice.
        row = pl.multiple_of(t * B, 8)
        h_new, c_new = lstm_cell(xproj_sc[pl.ds(row, B), :], h, c)
        out_ref[t] = h_new.astype(out_ref.dtype)
        return h_new, c_new

    # Bounded unroll: full at toy T, partial at production T.
    unroll = True if T <= 16 else 8
    hN, cN = lax.fori_loop(1, T, step, (h1, c1), unroll=unroll)

    hN_ref[...] = hN.astype(hN_ref.dtype)
    cN_ref[...] = cN.astype(cN_ref.dtype)


def _round_up(x, m):
    return (x + m - 1) // m * m


def decoder_forward(indices, hidden, params):
    """indices: (T, B) int32; hidden: (h0, c0) each (1, B, H)."""
    emb, w_ih, w_hh, b_ih, b_hh, w_out, b_out = params
    h0, c0 = hidden
    T, B = indices.shape
    E = emb.shape[1]
    H = h0.shape[-1]
    O = w_out.shape[0]

    # Padded sizes: batch -> sublane tile (8), feature dims -> 128 lanes.
    Bp = max(_round_up(B, 8), 8)
    Ep = _round_up(E, 128)
    Hp = _round_up(H, 128)
    Op = _round_up(O, 128)
    NEG = jnp.float32(-1e30)

    # Glue: embedding lookup (gather) + batch/feature padding.
    # TODO(synk): embedding gather stays in JAX glue (no dense Pallas gather).
    e = jnp.take(emb, indices.reshape(-1), axis=0).reshape(T, B, E)
    e = jnp.pad(e, ((0, 0), (0, Bp - B), (0, Ep - E))).reshape(T * Bp, Ep)

    # Glue: reorder gates [i, f, g, o] -> [i, f, o, g], transpose, pad.
    def build_w_t(w, in_dim, in_pad):
        gi, gf, gg, go = jnp.split(w, 4, axis=0)          # each (H, in_dim)
        cols = [jnp.pad(blk.T, ((0, in_pad - in_dim), (0, Hp - H)))
                for blk in (gi, gf, go, gg)]
        return jnp.concatenate(cols, axis=1)               # (in_pad, 4*Hp)

    def build_b(bvec):
        gi, gf, gg, go = jnp.split(bvec, 4)
        return jnp.concatenate(
            [jnp.pad(x, (0, Hp - H)) for x in (gi, gf, go, gg)]
        ).reshape(1, 4 * Hp)

    wih_t = build_w_t(w_ih, E, Ep)                         # (Ep, 4Hp)
    whh_t = build_w_t(w_hh, H, Hp)                         # (Hp, 4Hp)
    b = build_b(b_ih + b_hh)                               # (1, 4Hp)

    wout_t = jnp.pad(w_out.T, ((0, Hp - H), (0, Op - O)))  # (Hp, Op)
    bout = jnp.full((1, Op), NEG, jnp.float32).at[0, :O].set(b_out)

    h0p = jnp.pad(h0[0], ((0, Bp - B), (0, Hp - H)))
    c0p = jnp.pad(c0[0], ((0, Bp - B), (0, Hp - H)))

    out_shapes = (
        jax.ShapeDtypeStruct((T, Bp, Hp), jnp.float32),    # all hidden states
        jax.ShapeDtypeStruct((Bp, Op), jnp.float32),       # log_softmax head
        jax.ShapeDtypeStruct((Bp, Hp), jnp.float32),       # h_N
        jax.ShapeDtypeStruct((Bp, Hp), jnp.float32),       # c_N
    )

    out_p, so_p, hN_p, cN_p = pl.pallas_call(
        decoder_kernel,
        out_shape=out_shapes,
        scratch_shapes=[pltpu.VMEM((T * Bp, 4 * Hp), jnp.float32)],
        compiler_params=pltpu.CompilerParams(
            vmem_limit_bytes=32 * 1024 * 1024),
    )(e, h0p, c0p, wih_t, whh_t, b, wout_t, bout)

    # Un-pad.
    so = so_p[:B, :O]
    out = out_p[:, :B, :H]
    hN = hN_p[:B, :H][None]
    cN = cN_p[:B, :H][None]
    return so, (hN, cN), out


def decoder_reference(indices, hidden, params):
    """Pure-JAX reference matching PyTorch semantics exactly."""
    emb, w_ih, w_hh, b_ih, b_hh, w_out, b_out = params
    h0, c0 = hidden
    T, B = indices.shape
    E = emb.shape[1]
    H = h0.shape[-1]

    e = jnp.take(emb, indices.reshape(-1), axis=0).reshape(T, B, E)

    def step(carry, x):
        h, c = carry
        gates = x @ w_ih.T + h @ w_hh.T + b_ih + b_hh
        i = jax.nn.sigmoid(gates[:, 0 * H:1 * H])
        f = jax.nn.sigmoid(gates[:, 1 * H:2 * H])
        g = jnp.tanh(gates[:, 2 * H:3 * H])
        o = jax.nn.sigmoid(gates[:, 3 * H:4 * H])
        c = f * c + i * g
        h = o * jnp.tanh(c)
        return (h, c), h

    (hN, cN), outs = jax.lax.scan(step, (h0[0], c0[0]), e)
    logits = outs[0] @ w_out.T + b_out
    so = jax.nn.log_softmax(logits, axis=1)
    return so, (hN[None], cN[None]), outs


if __name__ == "__main__":
    # Small, deterministic config
    vocab_size, embedding_dim, hidden_dim, output_dim = 50, 32, 32, 40
    batch_size, seq_len = 2, 8

    key = jax.random.PRNGKey(0)
    ks = jax.random.split(key, 8)
    emb = jax.random.normal(ks[0], (vocab_size, embedding_dim), jnp.float32) * 0.1
    w_ih = jax.random.normal(ks[1], (4 * hidden_dim, embedding_dim), jnp.float32) * 0.1
    w_hh = jax.random.normal(ks[2], (4 * hidden_dim, hidden_dim), jnp.float32) * 0.1
    b_ih = jax.random.normal(ks[3], (4 * hidden_dim,), jnp.float32) * 0.1
    b_hh = jax.random.normal(ks[4], (4 * hidden_dim,), jnp.float32) * 0.1
    w_out = jax.random.normal(ks[5], (output_dim, hidden_dim), jnp.float32) * 0.1
    b_out = jax.random.normal(ks[6], (output_dim,), jnp.float32) * 0.1
    params = (emb, w_ih, w_hh, b_ih, b_hh, w_out, b_out)

    indices = jax.random.randint(ks[7], (seq_len, batch_size), 0, vocab_size, jnp.int32)
    h0 = jnp.zeros((1, batch_size, hidden_dim), jnp.float32)
    c0 = jnp.zeros((1, batch_size, hidden_dim), jnp.float32)

    so, (hN, cN), out = decoder_forward(indices, (h0, c0), params)
    jax.block_until_ready((so, hN, cN, out))

    so_r, (hN_r, cN_r), out_r = decoder_reference(indices, (h0, c0), params)
    assert jnp.allclose(so, so_r, atol=1e-3, rtol=1e-3)
    assert jnp.allclose(out, out_r, atol=1e-3, rtol=1e-3)
    assert jnp.allclose(hN, hN_r, atol=1e-3, rtol=1e-3)
    assert jnp.allclose(cN, cN_r, atol=1e-3, rtol=1e-3)

    print("KERNEL_OK")
</pallas_src>

<mosaic_0001>
module attributes {stable_mosaic.version = 11 : i64} {
  func.func @decoder_kernel(%arg0: memref<64x128xf32, #tpu.memory_space<vmem>>, %arg1: memref<8x128xf32, #tpu.memory_space<vmem>>, %arg2: memref<8x128xf32, #tpu.memory_space<vmem>>, %arg3: memref<128x512xf32, #tpu.memory_space<vmem>>, %arg4: memref<128x512xf32, #tpu.memory_space<vmem>>, %arg5: memref<1x512xf32, #tpu.memory_space<vmem>>, %arg6: memref<128x128xf32, #tpu.memory_space<vmem>>, %arg7: memref<1x128xf32, #tpu.memory_space<vmem>>, %arg8: memref<8x8x128xf32, #tpu.memory_space<vmem>>, %arg9: memref<8x128xf32, #tpu.memory_space<vmem>>, %arg10: memref<8x128xf32, #tpu.memory_space<vmem>>, %arg11: memref<8x128xf32, #tpu.memory_space<vmem>>, %arg12: memref<64x512xf32, #tpu.memory_space<vmem>>) attributes {dimension_semantics = [], scalar_prefetch = 0 : i64, scratch_operands = 1 : i64, tpu.core_type = #tpu.core_type<tc>} {
    %c0 = arith.constant 0 : index
    %c0_0 = arith.constant 0 : index
    %0 = vector.load %arg0[%c0, %c0_0] : memref<64x128xf32, #tpu.memory_space<vmem>>, vector<64x128xf32>
    %c0_1 = arith.constant 0 : index
    %c0_2 = arith.constant 0 : index
    %1 = vector.load %arg3[%c0_1, %c0_2] : memref<128x512xf32, #tpu.memory_space<vmem>>, vector<128x512xf32>
    %cst = arith.constant dense<0.000000e+00> : vector<64x512xf32>
    %2 = tpu.matmul %0, %1, %cst {dimension_numbers = #tpu.dot_dimension_numbers<[1], [0], [0], [1], [0, 0, 1, 1], [], []>} : vector<64x128xf32>, vector<128x512xf32>, vector<64x512xf32> -> vector<64x512xf32>
    %c0_3 = arith.constant 0 : index
    %c0_4 = arith.constant 0 : index
    %3 = vector.load %arg5[%c0_3, %c0_4] : memref<1x512xf32, #tpu.memory_space<vmem>>, vector<1x512xf32>
    %4 = vector.broadcast %3 : vector<1x512xf32> to vector<64x512xf32>
    %5 = arith.addf %2, %4 : vector<64x512xf32>
    %c0_5 = arith.constant 0 : index
    %c0_6 = arith.constant 0 : index
    %6 = vector.load %arg12[%c0_5, %c0_6] : memref<64x512xf32, #tpu.memory_space<vmem>>, vector<64x512xf32>
    tpu.vector_store %arg12[%c0_5, %c0_6], %5 {strides = array<i32>} : memref<64x512xf32, #tpu.memory_space<vmem>>, vector<64x512xf32>,
    %c0_7 = arith.constant 0 : index
    %c0_8 = arith.constant 0 : index
    %7 = vector.load %arg4[%c0_7, %c0_8] : memref<128x512xf32, #tpu.memory_space<vmem>>, vector<128x512xf32>
    %c0_9 = arith.constant 0 : index
    %c0_10 = arith.constant 0 : index
    %8 = vector.load %arg12[%c0_9, %c0_10] : memref<64x512xf32, #tpu.memory_space<vmem>>, vector<8x512xf32>
    %c0_11 = arith.constant 0 : index
    %c0_12 = arith.constant 0 : index
    %9 = vector.load %arg1[%c0_11, %c0_12] : memref<8x128xf32, #tpu.memory_space<vmem>>, vector<8x128xf32>
    %c0_13 = arith.constant 0 : index
    %c0_14 = arith.constant 0 : index
    %10 = vector.load %arg2[%c0_13, %c0_14] : memref<8x128xf32, #tpu.memory_space<vmem>>, vector<8x128xf32>
    %cst_15 = arith.constant dense<0.000000e+00> : vector<8x512xf32>
    %11 = tpu.matmul %9, %7, %cst_15 {dimension_numbers = #tpu.dot_dimension_numbers<[1], [0], [0], [1], [0, 0, 1, 1], [], []>} : vector<8x128xf32>, vector<128x512xf32>, vector<8x512xf32> -> vector<8x512xf32>
    %12 = arith.addf %8, %11 : vector<8x512xf32>
    %13 = vector.extract_strided_slice %12 {offsets = [0, 0], sizes = [8, 384], strides = [1, 1]} : vector<8x512xf32> to vector<8x384xf32>
    %14 = arith.negf %13 : vector<8x384xf32>
    %15 = math.exp %14 : vector<8x384xf32>
    %cst_16 = arith.constant 1.000000e+00 : f32
    %16 = vector.broadcast %cst_16 : f32 to vector<8x384xf32>
    %17 = arith.addf %16, %15 : vector<8x384xf32>
    %18 = arith.divf %16, %17 : vector<8x384xf32>
    %19 = vector.extract_strided_slice %12 {offsets = [0, 384], sizes = [8, 128], strides = [1, 1]} : vector<8x512xf32> to vector<8x128xf32>
    %20 = math.tanh %19 : vector<8x128xf32>
    %21 = vector.extract_strided_slice %18 {offsets = [0, 0], sizes = [8, 128], strides = [1, 1]} : vector<8x384xf32> to vector<8x128xf32>
    %22 = vector.extract_strided_slice %18 {offsets = [0, 128], sizes = [8, 128], strides = [1, 1]} : vector<8x384xf32> to vector<8x128xf32>
    %23 = vector.extract_strided_slice %18 {offsets = [0, 256], sizes = [8, 128], strides = [1, 1]} : vector<8x384xf32> to vector<8x128xf32>
    %24 = arith.mulf %22, %10 : vector<8x128xf32>
    %25 = arith.mulf %21, %20 : vector<8x128xf32>
    %26 = arith.addf %24, %25 : vector<8x128xf32>
    %27 = math.tanh %26 : vector<8x128xf32>
    %28 = arith.mulf %23, %27 : vector<8x128xf32>
    %c0_17 = arith.constant 0 : index
    %c0_18 = arith.constant 0 : index
    %c0_19 = arith.constant 0 : index
    %29 = vector.load %arg8[%c0_17, %c0_18, %c0_19] : memref<8x8x128xf32, #tpu.memory_space<vmem>>, vector<1x8x128xf32>
    %30 = vector.shape_cast %29 : vector<1x8x128xf32> to vector<8x128xf32>
    %31 = vector.shape_cast %28 : vector<8x128xf32> to vector<1x8x128xf32>
    tpu.vector_store %arg8[%c0_17, %c0_18, %c0_19], %31 {strides = array<i32>} : memref<8x8x128xf32, #tpu.memory_space<vmem>>, vector<1x8x128xf32>,
    %c0_20 = arith.constant 0 : index
    %c0_21 = arith.constant 0 : index
    %32 = vector.load %arg6[%c0_20, %c0_21] : memref<128x128xf32, #tpu.memory_space<vmem>>, vector<128x128xf32>
    %cst_22 = arith.constant dense<0.000000e+00> : vector<8x128xf32>
    %33 = tpu.matmul %28, %32, %cst_22 {dimension_numbers = #tpu.dot_dimension_numbers<[1], [0], [0], [1], [0, 0, 1, 1], [], []>} : vector<8x128xf32>, vector<128x128xf32>, vector<8x128xf32> -> vector<8x128xf32>
    %c0_23 = arith.constant 0 : index
    %c0_24 = arith.constant 0 : index
    %34 = vector.load %arg7[%c0_23, %c0_24] : memref<1x128xf32, #tpu.memory_space<vmem>>, vector<1x128xf32>
    %35 = vector.broadcast %34 : vector<1x128xf32> to vector<8x128xf32>
    %36 = arith.addf %33, %35 : vector<8x128xf32>
    %cst_25 = arith.constant dense<0xFF800000> : vector<8xf32>
    %37 = vector.multi_reduction <maximumf>, %36, %cst_25 [1] : vector<8x128xf32> to vector<8xf32>
    %38 = vector.shape_cast %37 : vector<8xf32> to vector<8x1xf32>
    %39 = vector.broadcast %38 : vector<8x1xf32> to vector<8x128xf32>
    %40 = arith.subf %36, %39 : vector<8x128xf32>
    %41 = math.exp %40 : vector<8x128xf32>
    %cst_26 = arith.constant dense<0.000000e+00> : vector<8xf32>
    %42 = vector.multi_reduction <add>, %41, %cst_26 [1] : vector<8x128xf32> to vector<8xf32>
    %43 = vector.shape_cast %42 : vector<8xf32> to vector<8x1xf32>
    %44 = math.log %43 : vector<8x1xf32>
    %45 = arith.addf %44, %38 : vector<8x1xf32>
    %46 = vector.broadcast %45 : vector<8x1xf32> to vector<8x128xf32>
    %47 = arith.subf %36, %46 : vector<8x128xf32>
    %c0_27 = arith.constant 0 : index
    %c0_28 = arith.constant 0 : index
    %48 = vector.load %arg9[%c0_27, %c0_28] : memref<8x128xf32, #tpu.memory_space<vmem>>, vector<8x128xf32>
    tpu.vector_store %arg9[%c0_27, %c0_28], %47 {strides = array<i32>} : memref<8x128xf32, #tpu.memory_space<vmem>>, vector<8x128xf32>,
    %c1_i32 = arith.constant 1 : i32
    %c8_i32 = arith.constant 8 : i32
    %49 = arith.muli %c1_i32, %c8_i32 : i32
    %50 = tpu.assume_multiple %49, 8 : i32
    %51 = arith.index_cast %50 : i32 to index
    %c0_29 = arith.constant 0 : index
    %52 = vector.load %arg12[%51, %c0_29] : memref<64x512xf32, #tpu.memory_space<vmem>>, vector<8x512xf32>
    %cst_30 = arith.constant dense<0.000000e+00> : vector<8x512xf32>
    %53 = tpu.matmul %28, %7, %cst_30 {dimension_numbers = #tpu.dot_dimension_numbers<[1], [0], [0], [1], [0, 0, 1, 1], [], []>} : vector<8x128xf32>, vector<128x512xf32>, vector<8x512xf32> -> vector<8x512xf32>
    %54 = arith.addf %52, %53 : vector<8x512xf32>
    %55 = vector.extract_strided_slice %54 {offsets = [0, 0], sizes = [8, 384], strides = [1, 1]} : vector<8x512xf32> to vector<8x384xf32>
    %56 = arith.negf %55 : vector<8x384xf32>
    %57 = math.exp %56 : vector<8x384xf32>
    %cst_31 = arith.constant 1.000000e+00 : f32
    %58 = vector.broadcast %cst_31 : f32 to vector<8x384xf32>
    %59 = arith.addf %58, %57 : vector<8x384xf32>
    %60 = arith.divf %58, %59 : vector<8x384xf32>
    %61 = vector.extract_strided_slice %54 {offsets = [0, 384], sizes = [8, 128], strides = [1, 1]} : vector<8x512xf32> to vector<8x128xf32>
    %62 = math.tanh %61 : vector<8x128xf32>
    %63 = vector.extract_strided_slice %60 {offsets = [0, 0], sizes = [8, 128], strides = [1, 1]} : vector<8x384xf32> to vector<8x128xf32>
    %64 = vector.extract_strided_slice %60 {offsets = [0, 128], sizes = [8, 128], strides = [1, 1]} : vector<8x384xf32> to vector<8x128xf32>
    %65 = vector.extract_strided_slice %60 {offsets = [0, 256], sizes = [8, 128], strides = [1, 1]} : vector<8x384xf32> to vector<8x128xf32>
    %66 = arith.mulf %64, %26 : vector<8x128xf32>
    %67 = arith.mulf %63, %62 : vector<8x128xf32>
    %68 = arith.addf %66, %67 : vector<8x128xf32>
    %69 = math.tanh %68 : vector<8x128xf32>
    %70 = arith.mulf %65, %69 : vector<8x128xf32>
    %71 = arith.index_cast %c1_i32 : i32 to index
    %c0_32 = arith.constant 0 : index
    %c0_33 = arith.constant 0 : index
    %72 = vector.load %arg8[%71, %c0_32, %c0_33] : memref<8x8x128xf32, #tpu.memory_space<vmem>>, vector<1x8x128xf32>
    %73 = vector.shape_cast %72 : vector<1x8x128xf32> to vector<8x128xf32>
    %74 = vector.shape_cast %70 : vector<8x128xf32> to vector<1x8x128xf32>
    tpu.vector_store %arg8[%71, %c0_32, %c0_33], %74 {strides = array<i32>} : memref<8x8x128xf32, #tpu.memory_space<vmem>>, vector<1x8x128xf32>,
    %c2_i32 = arith.constant 2 : i32
    %c8_i32_34 = arith.constant 8 : i32
    %75 = arith.muli %c2_i32, %c8_i32_34 : i32
    %76 = tpu.assume_multiple %75, 8 : i32
    %77 = arith.index_cast %76 : i32 to index
    %c0_35 = arith.constant 0 : index
    %78 = vector.load %arg12[%77, %c0_35] : memref<64x512xf32, #tpu.memory_space<vmem>>, vector<8x512xf32>
    %cst_36 = arith.constant dense<0.000000e+00> : vector<8x512xf32>
    %79 = tpu.matmul %70, %7, %cst_36 {dimension_numbers = #tpu.dot_dimension_numbers<[1], [0], [0], [1], [0, 0, 1, 1], [], []>} : vector<8x128xf32>, vector<128x512xf32>, vector<8x512xf32> -> vector<8x512xf32>
    %80 = arith.addf %78, %79 : vector<8x512xf32>
    %81 = vector.extract_strided_slice %80 {offsets = [0, 0], sizes = [8, 384], strides = [1, 1]} : vector<8x512xf32> to vector<8x384xf32>
    %82 = arith.negf %81 : vector<8x384xf32>
    %83 = math.exp %82 : vector<8x384xf32>
    %cst_37 = arith.constant 1.000000e+00 : f32
    %84 = vector.broadcast %cst_37 : f32 to vector<8x384xf32>
    %85 = arith.addf %84, %83 : vector<8x384xf32>
    %86 = arith.divf %84, %85 : vector<8x384xf32>
    %87 = vector.extract_strided_slice %80 {offsets = [0, 384], sizes = [8, 128], strides = [1, 1]} : vector<8x512xf32> to vector<8x128xf32>
    %88 = math.tanh %87 : vector<8x128xf32>
    %89 = vector.extract_strided_slice %86 {offsets = [0, 0], sizes = [8, 128], strides = [1, 1]} : vector<8x384xf32> to vector<8x128xf32>
    %90 = vector.extract_strided_slice %86 {offsets = [0, 128], sizes = [8, 128], strides = [1, 1]} : vector<8x384xf32> to vector<8x128xf32>
    %91 = vector.extract_strided_slice %86 {offsets = [0, 256], sizes = [8, 128], strides = [1, 1]} : vector<8x384xf32> to vector<8x128xf32>
    %92 = arith.mulf %90, %68 : vector<8x128xf32>
    %93 = arith.mulf %89, %88 : vector<8x128xf32>
    %94 = arith.addf %92, %93 : vector<8x128xf32>
    %95 = math.tanh %94 : vector<8x128xf32>
    %96 = arith.mulf %91, %95 : vector<8x128xf32>
    %97 = arith.index_cast %c2_i32 : i32 to index
    %c0_38 = arith.constant 0 : index
    %c0_39 = arith.constant 0 : index
    %98 = vector.load %arg8[%97, %c0_38, %c0_39] : memref<8x8x128xf32, #tpu.memory_space<vmem>>, vector<1x8x128xf32>
    %99 = vector.shape_cast %98 : vector<1x8x128xf32> to vector<8x128xf32>
    %100 = vector.shape_cast %96 : vector<8x128xf32> to vector<1x8x128xf32>
    tpu.vector_store %arg8[%97, %c0_38, %c0_39], %100 {strides = array<i32>} : memref<8x8x128xf32, #tpu.memory_space<vmem>>, vector<1x8x128xf32>,
    %c3_i32 = arith.constant 3 : i32
    %c8_i32_40 = arith.constant 8 : i32
    %101 = arith.muli %c3_i32, %c8_i32_40 : i32
    %102 = tpu.assume_multiple %101, 8 : i32
    %103 = arith.index_cast %102 : i32 to index
    %c0_41 = arith.constant 0 : index
    %104 = vector.load %arg12[%103, %c0_41] : memref<64x512xf32, #tpu.memory_space<vmem>>, vector<8x512xf32>
    %cst_42 = arith.constant dense<0.000000e+00> : vector<8x512xf32>
    %105 = tpu.matmul %96, %7, %cst_42 {dimension_numbers = #tpu.dot_dimension_numbers<[1], [0], [0], [1], [0, 0, 1, 1], [], []>} : vector<8x128xf32>, vector<128x512xf32>, vector<8x512xf32> -> vector<8x512xf32>
    %106 = arith.addf %104, %105 : vector<8x512xf32>
    %107 = vector.extract_strided_slice %106 {offsets = [0, 0], sizes = [8, 384], strides = [1, 1]} : vector<8x512xf32> to vector<8x384xf32>
    %108 = arith.negf %107 : vector<8x384xf32>
    %109 = math.exp %108 : vector<8x384xf32>
    %cst_43 = arith.constant 1.000000e+00 : f32
    %110 = vector.broadcast %cst_43 : f32 to vector<8x384xf32>
    %111 = arith.addf %110, %109 : vector<8x384xf32>
    %112 = arith.divf %110, %111 : vector<8x384xf32>
    %113 = vector.extract_strided_slice %106 {offsets = [0, 384], sizes = [8, 128], strides = [1, 1]} : vector<8x512xf32> to vector<8x128xf32>
    %114 = math.tanh %113 : vector<8x128xf32>
    %115 = vector.extract_strided_slice %112 {offsets = [0, 0], sizes = [8, 128], strides = [1, 1]} : vector<8x384xf32> to vector<8x128xf32>
    %116 = vector.extract_strided_slice %112 {offsets = [0, 128], sizes = [8, 128], strides = [1, 1]} : vector<8x384xf32> to vector<8x128xf32>
    %117 = vector.extract_strided_slice %112 {offsets = [0, 256], sizes = [8, 128], strides = [1, 1]} : vector<8x384xf32> to vector<8x128xf32>
    %118 = arith.mulf %116, %94 : vector<8x128xf32>
    %119 = arith.mulf %115, %114 : vector<8x128xf32>
    %120 = arith.addf %118, %119 : vector<8x128xf32>
    %121 = math.tanh %120 : vector<8x128xf32>
    %122 = arith.mulf %117, %121 : vector<8x128xf32>
    %123 = arith.index_cast %c3_i32 : i32 to index
    %c0_44 = arith.constant 0 : index
    %c0_45 = arith.constant 0 : index
    %124 = vector.load %arg8[%123, %c0_44, %c0_45] : memref<8x8x128xf32, #tpu.memory_space<vmem>>, vector<1x8x128xf32>
    %125 = vector.shape_cast %124 : vector<1x8x128xf32> to vector<8x128xf32>
    %126 = vector.shape_cast %122 : vector<8x128xf32> to vector<1x8x128xf32>
    tpu.vector_store %arg8[%123, %c0_44, %c0_45], %126 {strides = array<i32>} : memref<8x8x128xf32, #tpu.memory_space<vmem>>, vector<1x8x128xf32>,
    %c4_i32 = arith.constant 4 : i32
    %c8_i32_46 = arith.constant 8 : i32
    %127 = arith.muli %c4_i32, %c8_i32_46 : i32
    %128 = tpu.assume_multiple %127, 8 : i32
    %129 = arith.index_cast %128 : i32 to index
    %c0_47 = arith.constant 0 : index
    %130 = vector.load %arg12[%129, %c0_47] : memref<64x512xf32, #tpu.memory_space<vmem>>, vector<8x512xf32>
    %cst_48 = arith.constant dense<0.000000e+00> : vector<8x512xf32>
    %131 = tpu.matmul %122, %7, %cst_48 {dimension_numbers = #tpu.dot_dimension_numbers<[1], [0], [0], [1], [0, 0, 1, 1], [], []>} : vector<8x128xf32>, vector<128x512xf32>, vector<8x512xf32> -> vector<8x512xf32>
    %132 = arith.addf %130, %131 : vector<8x512xf32>
    %133 = vector.extract_strided_slice %132 {offsets = [0, 0], sizes = [8, 384], strides = [1, 1]} : vector<8x512xf32> to vector<8x384xf32>
    %134 = arith.negf %133 : vector<8x384xf32>
    %135 = math.exp %134 : vector<8x384xf32>
    %cst_49 = arith.constant 1.000000e+00 : f32
    %136 = vector.broadcast %cst_49 : f32 to vector<8x384xf32>
    %137 = arith.addf %136, %135 : vector<8x384xf32>
    %138 = arith.divf %136, %137 : vector<8x384xf32>
    %139 = vector.extract_strided_slice %132 {offsets = [0, 384], sizes = [8, 128], strides = [1, 1]} : vector<8x512xf32> to vector<8x128xf32>
    %140 = math.tanh %139 : vector<8x128xf32>
    %141 = vector.extract_strided_slice %138 {offsets = [0, 0], sizes = [8, 128], strides = [1, 1]} : vector<8x384xf32> to vector<8x128xf32>
    %142 = vector.extract_strided_slice %138 {offsets = [0, 128], sizes = [8, 128], strides = [1, 1]} : vector<8x384xf32> to vector<8x128xf32>
    %143 = vector.extract_strided_slice %138 {offsets = [0, 256], sizes = [8, 128], strides = [1, 1]} : vector<8x384xf32> to vector<8x128xf32>
    %144 = arith.mulf %142, %120 : vector<8x128xf32>
    %145 = arith.mulf %141, %140 : vector<8x128xf32>
    %146 = arith.addf %144, %145 : vector<8x128xf32>
    %147 = math.tanh %146 : vector<8x128xf32>
    %148 = arith.mulf %143, %147 : vector<8x128xf32>
    %149 = arith.index_cast %c4_i32 : i32 to index
    %c0_50 = arith.constant 0 : index
    %c0_51 = arith.constant 0 : index
    %150 = vector.load %arg8[%149, %c0_50, %c0_51] : memref<8x8x128xf32, #tpu.memory_space<vmem>>, vector<1x8x128xf32>
    %151 = vector.shape_cast %150 : vector<1x8x128xf32> to vector<8x128xf32>
    %152 = vector.shape_cast %148 : vector<8x128xf32> to vector<1x8x128xf32>
    tpu.vector_store %arg8[%149, %c0_50, %c0_51], %152 {strides = array<i32>} : memref<8x8x128xf32, #tpu.memory_space<vmem>>, vector<1x8x128xf32>,
    %c5_i32 = arith.constant 5 : i32
    %c8_i32_52 = arith.constant 8 : i32
    %153 = arith.muli %c5_i32, %c8_i32_52 : i32
    %154 = tpu.assume_multiple %153, 8 : i32
    %155 = arith.index_cast %154 : i32 to index
    %c0_53 = arith.constant 0 : index
    %156 = vector.load %arg12[%155, %c0_53] : memref<64x512xf32, #tpu.memory_space<vmem>>, vector<8x512xf32>
    %cst_54 = arith.constant dense<0.000000e+00> : vector<8x512xf32>
    %157 = tpu.matmul %148, %7, %cst_54 {dimension_numbers = #tpu.dot_dimension_numbers<[1], [0], [0], [1], [0, 0, 1, 1], [], []>} : vector<8x128xf32>, vector<128x512xf32>, vector<8x512xf32> -> vector<8x512xf32>
    %158 = arith.addf %156, %157 : vector<8x512xf32>
    %159 = vector.extract_strided_slice %158 {offsets = [0, 0], sizes = [8, 384], strides = [1, 1]} : vector<8x512xf32> to vector<8x384xf32>
    %160 = arith.negf %159 : vector<8x384xf32>
    %161 = math.exp %160 : vector<8x384xf32>
    %cst_55 = arith.constant 1.000000e+00 : f32
    %162 = vector.broadcast %cst_55 : f32 to vector<8x384xf32>
    %163 = arith.addf %162, %161 : vector<8x384xf32>
    %164 = arith.divf %162, %163 : vector<8x384xf32>
    %165 = vector.extract_strided_slice %158 {offsets = [0, 384], sizes = [8, 128], strides = [1, 1]} : vector<8x512xf32> to vector<8x128xf32>
    %166 = math.tanh %165 : vector<8x128xf32>
    %167 = vector.extract_strided_slice %164 {offsets = [0, 0], sizes = [8, 128], strides = [1, 1]} : vector<8x384xf32> to vector<8x128xf32>
    %168 = vector.extract_strided_slice %164 {offsets = [0, 128], sizes = [8, 128], strides = [1, 1]} : vector<8x384xf32> to vector<8x128xf32>
    %169 = vector.extract_strided_slice %164 {offsets = [0, 256], sizes = [8, 128], strides = [1, 1]} : vector<8x384xf32> to vector<8x128xf32>
    %170 = arith.mulf %168, %146 : vector<8x128xf32>
    %171 = arith.mulf %167, %166 : vector<8x128xf32>
    %172 = arith.addf %170, %171 : vector<8x128xf32>
    %173 = math.tanh %172 : vector<8x128xf32>
    %174 = arith.mulf %169, %173 : vector<8x128xf32>
    %175 = arith.index_cast %c5_i32 : i32 to index
    %c0_56 = arith.constant 0 : index
    %c0_57 = arith.constant 0 : index
    %176 = vector.load %arg8[%175, %c0_56, %c0_57] : memref<8x8x128xf32, #tpu.memory_space<vmem>>, vector<1x8x128xf32>
    %177 = vector.shape_cast %176 : vector<1x8x128xf32> to vector<8x128xf32>
    %178 = vector.shape_cast %174 : vector<8x128xf32> to vector<1x8x128xf32>
    tpu.vector_store %arg8[%175, %c0_56, %c0_57], %178 {strides = array<i32>} : memref<8x8x128xf32, #tpu.memory_space<vmem>>, vector<1x8x128xf32>,
    %c6_i32 = arith.constant 6 : i32
    %c8_i32_58 = arith.constant 8 : i32
    %179 = arith.muli %c6_i32, %c8_i32_58 : i32
    %180 = tpu.assume_multiple %179, 8 : i32
    %181 = arith.index_cast %180 : i32 to index
    %c0_59 = arith.constant 0 : index
    %182 = vector.load %arg12[%181, %c0_59] : memref<64x512xf32, #tpu.memory_space<vmem>>, vector<8x512xf32>
    %cst_60 = arith.constant dense<0.000000e+00> : vector<8x512xf32>
    %183 = tpu.matmul %174, %7, %cst_60 {dimension_numbers = #tpu.dot_dimension_numbers<[1], [0], [0], [1], [0, 0, 1, 1], [], []>} : vector<8x128xf32>, vector<128x512xf32>, vector<8x512xf32> -> vector<8x512xf32>
    %184 = arith.addf %182, %183 : vector<8x512xf32>
    %185 = vector.extract_strided_slice %184 {offsets = [0, 0], sizes = [8, 384], strides = [1, 1]} : vector<8x512xf32> to vector<8x384xf32>
    %186 = arith.negf %185 : vector<8x384xf32>
    %187 = math.exp %186 : vector<8x384xf32>
    %cst_61 = arith.constant 1.000000e+00 : f32
    %188 = vector.broadcast %cst_61 : f32 to vector<8x384xf32>
    %189 = arith.addf %188, %187 : vector<8x384xf32>
    %190 = arith.divf %188, %189 : vector<8x384xf32>
    %191 = vector.extract_strided_slice %184 {offsets = [0, 384], sizes = [8, 128], strides = [1, 1]} : vector<8x512xf32> to vector<8x128xf32>
    %192 = math.tanh %191 : vector<8x128xf32>
    %193 = vector.extract_strided_slice %190 {offsets = [0, 0], sizes = [8, 128], strides = [1, 1]} : vector<8x384xf32> to vector<8x128xf32>
    %194 = vector.extract_strided_slice %190 {offsets = [0, 128], sizes = [8, 128], strides = [1, 1]} : vector<8x384xf32> to vector<8x128xf32>
    %195 = vector.extract_strided_slice %190 {offsets = [0, 256], sizes = [8, 128], strides = [1, 1]} : vector<8x384xf32> to vector<8x128xf32>
    %196 = arith.mulf %194, %172 : vector<8x128xf32>
    %197 = arith.mulf %193, %192 : vector<8x128xf32>
    %198 = arith.addf %196, %197 : vector<8x128xf32>
    %199 = math.tanh %198 : vector<8x128xf32>
    %200 = arith.mulf %195, %199 : vector<8x128xf32>
    %201 = arith.index_cast %c6_i32 : i32 to index
    %c0_62 = arith.constant 0 : index
    %c0_63 = arith.constant 0 : index
    %202 = vector.load %arg8[%201, %c0_62, %c0_63] : memref<8x8x128xf32, #tpu.memory_space<vmem>>, vector<1x8x128xf32>
    %203 = vector.shape_cast %202 : vector<1x8x128xf32> to vector<8x128xf32>
    %204 = vector.shape_cast %200 : vector<8x128xf32> to vector<1x8x128xf32>
    tpu.vector_store %arg8[%201, %c0_62, %c0_63], %204 {strides = array<i32>} : memref<8x8x128xf32, #tpu.memory_space<vmem>>, vector<1x8x128xf32>,
    %c7_i32 = arith.constant 7 : i32
    %c8_i32_64 = arith.constant 8 : i32
    %205 = arith.muli %c7_i32, %c8_i32_64 : i32
    %206 = tpu.assume_multiple %205, 8 : i32
    %207 = arith.index_cast %206 : i32 to index
    %c0_65 = arith.constant 0 : index
    %208 = vector.load %arg12[%207, %c0_65] : memref<64x512xf32, #tpu.memory_space<vmem>>, vector<8x512xf32>
    %cst_66 = arith.constant dense<0.000000e+00> : vector<8x512xf32>
    %209 = tpu.matmul %200, %7, %cst_66 {dimension_numbers = #tpu.dot_dimension_numbers<[1], [0], [0], [1], [0, 0, 1, 1], [], []>} : vector<8x128xf32>, vector<128x512xf32>, vector<8x512xf32> -> vector<8x512xf32>
    %210 = arith.addf %208, %209 : vector<8x512xf32>
    %211 = vector.extract_strided_slice %210 {offsets = [0, 0], sizes = [8, 384], strides = [1, 1]} : vector<8x512xf32> to vector<8x384xf32>
    %212 = arith.negf %211 : vector<8x384xf32>
    %213 = math.exp %212 : vector<8x384xf32>
    %cst_67 = arith.constant 1.000000e+00 : f32
    %214 = vector.broadcast %cst_67 : f32 to vector<8x384xf32>
    %215 = arith.addf %214, %213 : vector<8x384xf32>
    %216 = arith.divf %214, %215 : vector<8x384xf32>
    %217 = vector.extract_strided_slice %210 {offsets = [0, 384], sizes = [8, 128], strides = [1, 1]} : vector<8x512xf32> to vector<8x128xf32>
    %218 = math.tanh %217 : vector<8x128xf32>
    %219 = vector.extract_strided_slice %216 {offsets = [0, 0], sizes = [8, 128], strides = [1, 1]} : vector<8x384xf32> to vector<8x128xf32>
    %220 = vector.extract_strided_slice %216 {offsets = [0, 128], sizes = [8, 128], strides = [1, 1]} : vector<8x384xf32> to vector<8x128xf32>
    %221 = vector.extract_strided_slice %216 {offsets = [0, 256], sizes = [8, 128], strides = [1, 1]} : vector<8x384xf32> to vector<8x128xf32>
    %222 = arith.mulf %220, %198 : vector<8x128xf32>
    %223 = arith.mulf %219, %218 : vector<8x128xf32>
    %224 = arith.addf %222, %223 : vector<8x128xf32>
    %225 = math.tanh %224 : vector<8x128xf32>
    %226 = arith.mulf %221, %225 : vector<8x128xf32>
    %227 = arith.index_cast %c7_i32 : i32 to index
    %c0_68 = arith.constant 0 : index
    %c0_69 = arith.constant 0 : index
    %228 = vector.load %arg8[%227, %c0_68, %c0_69] : memref<8x8x128xf32, #tpu.memory_space<vmem>>, vector<1x8x128xf32>
    %229 = vector.shape_cast %228 : vector<1x8x128xf32> to vector<8x128xf32>
    %230 = vector.shape_cast %226 : vector<8x128xf32> to vector<1x8x128xf32>
    tpu.vector_store %arg8[%227, %c0_68, %c0_69], %230 {strides = array<i32>} : memref<8x8x128xf32, #tpu.memory_space<vmem>>, vector<1x8x128xf32>,
    %c7_i32_70 = arith.constant 7 : i32
    %c0_71 = arith.constant 0 : index
    %c0_72 = arith.constant 0 : index
    %231 = vector.load %arg10[%c0_71, %c0_72] : memref<8x128xf32, #tpu.memory_space<vmem>>, vector<8x128xf32>
    tpu.vector_store %arg10[%c0_71, %c0_72], %226 {strides = array<i32>} : memref<8x128xf32, #tpu.memory_space<vmem>>, vector<8x128xf32>,
    %c0_73 = arith.constant 0 : index
    %c0_74 = arith.constant 0 : index
    %232 = vector.load %arg11[%c0_73, %c0_74] : memref<8x128xf32, #tpu.memory_space<vmem>>, vector<8x128xf32>
    tpu.vector_store %arg11[%c0_73, %c0_74], %224 {strides = array<i32>} : memref<8x128xf32, #tpu.memory_space<vmem>>, vector<8x128xf32>,
    return
  }
}

</mosaic_0001>

<bundles_post_ra>
// kernel: tpu_custom_call.1
= control target key start
LH: loop header
LB: loop body
LE: loop exit
PB: predicated region body
PF: predicated region fallthrough
CT: control target
= control target key end

     0   :  { %17 = vsyncpa [#allocation4], 0  ;;  %s3906_s0 = inlined_call_operand.hbm [shape: f32[64,128], index: 0, kind: input, shape index: {}]   ;;  %s3907_s1 = inlined_call_operand.hbm [shape: f32[8,128], index: 1, kind: input, shape index: {}]   ;;  %s3908_s2 = inlined_call_operand.hbm [shape: f32[8,128], index: 2, kind: input, shape index: {}]   ;;  %s3909_s3 = inlined_call_operand.hbm [shape: f32[128,512], index: 3, kind: input, shape index: {}]   ;;  %s3910_s4 = inlined_call_operand.hbm [shape: f32[128,512], index: 4, kind: input, shape index: {}]   ;;  %s3911_s5 = inlined_call_operand.vmem [shape: f32[1,512], index: 5, kind: input, shape index: {}]   ;;  %s3912_s6 = inlined_call_operand.hbm [shape: f32[128,128], index: 6, kind: input, shape index: {}]   ;;  %s3913_s7 = inlined_call_operand.vmem [shape: f32[1,128], index: 7, kind: input, shape index: {}]   ;;  %s3914_s8 = inlined_call_operand.hbm [shape: f32[8,8,128], index: 8, kind: output, shape index: {0}]   ;;  %s3915_s9 = inlined_call_operand.hbm [shape: f32[8,128], index: 9, kind: output, shape index: {1}]   ;;  %s3916_s10 = inlined_call_operand.hbm [shape: f32[8,128], index: 10, kind: output, shape index: {2}]   ;;  %s3917_s11 = inlined_call_operand.hbm [shape: f32[8,128], index: 11, kind: output, shape index: {3}]  }
   0x1   :  { %18 = vsyncpa [#allocation7], 0 }
   0x2   :  { %19 = vsyncpa [#allocation10], 0 }
   0x3   :  { %20 = vsyncpa [#allocation13], 0 }
   0x4   :  { %21 = vsyncpa [#allocation5], 0 }
   0x5   :  { %22 = vsyncpa [#allocation16], 0 }
   0x6   :  { %23 = vsyncpa [#allocation19], 0  ;;  %s3259_s17 = smov [#allocation6]   ;;  %s3260_s19 = smov [#allocation9]  }
   0x7   :  { %s42_s18 = sshll.u32 %s3259_s17, 4  ;;  %s61_s20 = sshll.u32 %s3260_s19, 4  ;;  %s43_s18 = int_to_ptr.vmem [resolvable:$true] %s42_s18  ;;  %s3336_s20 = int_to_ptr.vmem [resolvable:$true] %s61_s20 }
   0x8   :  { %s3025_s23 = scalar_lea.hbm %s3907_s1, 128 }
   0x9   :  { %p3026_p0 = scmp.ne.s32.totalorder %s3907_s1, %s3025_s23  ;;  %p3029_p1 = scmp.lt.u32.totalorder %s3025_s23, %s3907_s1 }
   0xb   :  { %p3031_p2 = pnand %p3029_p1, %p3026_p0 }
   0xd   :  { %3034 = shalt.err (!%p3031_p2)
}
   0xe   :  { %s3035_s28 = scalar_lea.vmem %s43_s18, 128  ;;  %p3040_p4 = scmp.lt.s32.totalorder %s43_s18, %s43_s18 }
   0xf   :  { %p3036_p3 = scmp.ne.s32.totalorder %s43_s18, %s3035_s28  ;;  %p3041_p5 = scmp.lt.s32.totalorder %s3035_s28, %s3035_s28 }
  0x11   :  { %p3042_p6 = por %p3041_p5, %p3040_p4 }
  0x13   :  { %p3043_p7 = pnand %p3042_p6, %p3036_p3 }
  0x15   :  { %3046 = shalt.err (!%p3043_p7)
}
  0x16   :  { %45 = dma.hbm_to_vmem [thread:$0]  %s3907_s1, 128, %s43_s18, [#allocation7]  }
  0x17   :  { %s3047_s14 = scalar_lea.hbm %s3909_s3, 8192 }
  0x18   :  { %p3048_p8 = scmp.ne.s32.totalorder %s3909_s3, %s3047_s14  ;;  %p3051_p9 = scmp.lt.u32.totalorder %s3047_s14, %s3909_s3 }
  0x1a   :  { %p3053_p10 = pnand %p3051_p9, %p3048_p8 }
  0x1c   :  { %3056 = shalt.err (!%p3053_p10)
}
  0x1d   :  { %s3057_s21 = scalar_lea.vmem %s3336_s20, 8192  ;;  %p3062_p12 = scmp.lt.s32.totalorder %s3336_s20, %s3336_s20 }
  0x1e   :  { %p3058_p11 = scmp.ne.s32.totalorder %s3336_s20, %s3057_s21  ;;  %p3063_p13 = scmp.lt.s32.totalorder %s3057_s21, %s3057_s21 }
  0x20   :  { %p3064_p0 = por %p3063_p13, %p3062_p12 }
  0x22   :  { %p3065_p1 = pnand %p3064_p0, %p3058_p11 }
  0x24   :  { %3068 = shalt.err (!%p3065_p1)
}
  0x25   :  { %s3261_s1 = smov 512   ;;  %s3262_s18 = smov 32  }
  0x26   :  { %67 = dma.hbm_to_vmem [thread:$0]  %s3909_s3, 8192, %s3336_s20, [#allocation10], %s3261_s1, %s3261_s1, %s3262_s18  }
  0x27   :  { %s3263_s24 = smov [#allocation3]   ;;  %s3069_s28 = scalar_lea.hbm %s3906_s0, 1024 }
  0x28   :  { %s29_s25 = sshll.u32 %s3263_s24, 4  ;;  %p3070_p2 = scmp.ne.s32.totalorder %s3906_s0, %s3069_s28  ;;  %s30_s25 = int_to_ptr.vmem [resolvable:$true] %s29_s25 }
  0x29   :  { %p3073_p3 = scmp.lt.u32.totalorder %s3069_s28, %s3906_s0 }
  0x2b   :  { %p3075_p4 = pnand %p3073_p3, %p3070_p2 }
  0x2d   :  { %3078 = shalt.err (!%p3075_p4)
}
  0x2e   :  { %s3079_s14 = scalar_lea.vmem %s30_s25, 1024  ;;  %p3084_p6 = scmp.lt.s32.totalorder %s30_s25, %s30_s25 }
  0x2f   :  { %p3080_p5 = scmp.ne.s32.totalorder %s30_s25, %s3079_s14  ;;  %p3085_p7 = scmp.lt.s32.totalorder %s3079_s14, %s3079_s14 }
  0x31   :  { %p3086_p8 = por %p3085_p7, %p3084_p6 }
  0x33   :  { %p3087_p9 = pnand %p3086_p8, %p3080_p5 }
  0x35   :  { %3090 = shalt.err (!%p3087_p9)
}
  0x36   :  { %s3264_s3 = smov 128   ;;  %s3265_s20 = smov 8  }
  0x37   :  { %35 = dma.hbm_to_vmem [thread:$0]  %s3906_s0, 1024, %s30_s25, [#allocation4], %s3264_s3, %s3264_s3, %s3265_s20  }
  0x38   :  { %s3266_s17 = smov [#allocation8]   ;;  %s3267_s21 = smov [#allocation11]  }
  0x39   :  { %s52_s19 = sshll.u32 %s3266_s17, 4  ;;  %s73_s22 = sshll.u32 %s3267_s21, 4  ;;  %s53_s19 = int_to_ptr.vmem [resolvable:$true] %s52_s19  ;;  %s74_s22 = int_to_ptr.vmem [resolvable:$true] %s73_s22 }
  0x3a   :  { %s3091_s26 = scalar_lea.hbm %s3908_s2, 128 }
  0x3b   :  { %p3092_p10 = scmp.ne.s32.totalorder %s3908_s2, %s3091_s26  ;;  %p3095_p11 = scmp.lt.u32.totalorder %s3091_s26, %s3908_s2 }
  0x3d   :  { %p3097_p12 = pnand %p3095_p11, %p3092_p10 }
  0x3f   :  { %3100 = shalt.err (!%p3097_p12)
}
  0x40   :  { %s3101_s0 = scalar_lea.vmem %s53_s19, 128  ;;  %p3106_p0 = scmp.lt.s32.totalorder %s53_s19, %s53_s19 }
  0x41   :  { %p3102_p13 = scmp.ne.s32.totalorder %s53_s19, %s3101_s0  ;;  %p3107_p1 = scmp.lt.s32.totalorder %s3101_s0, %s3101_s0 }
  0x43   :  { %p3108_p2 = por %p3107_p1, %p3106_p0 }
  0x45   :  { %p3109_p3 = pnand %p3108_p2, %p3102_p13 }
  0x47   :  { %3112 = shalt.err (!%p3109_p3)
}
  0x48   :  { %55 = dma.hbm_to_vmem [thread:$0]  %s3908_s2, 128, %s53_s19, [#allocation7]  }
  0x49   :  { %s3113_s15 = scalar_lea.hbm %s3910_s4, 8192 }
  0x4a   :  { %p3114_p4 = scmp.ne.s32.totalorder %s3910_s4, %s3113_s15  ;;  %p3117_p5 = scmp.lt.u32.totalorder %s3113_s15, %s3910_s4 }
  0x4c   :  { %p3119_p6 = pnand %p3117_p5, %p3114_p4 }
  0x4e   :  { %3122 = shalt.err (!%p3119_p6)
}
  0x4f   :  { %s3123_s24 = scalar_lea.vmem %s74_s22, 8192  ;;  %p3128_p8 = scmp.lt.s32.totalorder %s74_s22, %s74_s22 }
  0x50   :  { %p3124_p7 = scmp.ne.s32.totalorder %s74_s22, %s3123_s24  ;;  %p3129_p9 = scmp.lt.s32.totalorder %s3123_s24, %s3123_s24 }
  0x52   :  { %p3130_p10 = por %p3129_p9, %p3128_p8 }
  0x54   :  { %p3131_p11 = pnand %p3130_p10, %p3124_p7 }
  0x56   :  { %3134 = shalt.err (!%p3131_p11)
}
  0x57   :  { %79 = dma.hbm_to_vmem [thread:$0]  %s3910_s4, 8192, %s74_s22, [#allocation10], %s3261_s1, %s3261_s1, %s3262_s18  }
  0x58   :  { %s3268_s26 = smov [#allocation12]   ;;  %s3135_s30 = scalar_lea.hbm %s3912_s6, 2048 }
  0x59   :  { %s87_s27 = sshll.u32 %s3268_s26, 4  ;;  %p3136_p12 = scmp.ne.s32.totalorder %s3912_s6, %s3135_s30  ;;  %s88_s27 = int_to_ptr.vmem [resolvable:$true] %s87_s27 }
  0x5a   :  { %p3139_p13 = scmp.lt.u32.totalorder %s3135_s30, %s3912_s6 }
  0x5c   :  { %p3141_p0 = pnand %p3139_p13, %p3136_p12 }
  0x5e   :  { %3144 = shalt.err (!%p3141_p0)
}
  0x5f   :  { %s3145_s14 = scalar_lea.vmem %s88_s27, 2048  ;;  %p3150_p2 = scmp.lt.s32.totalorder %s88_s27, %s88_s27 }
  0x60   :  { %p3146_p1 = scmp.ne.s32.totalorder %s88_s27, %s3145_s14  ;;  %p3151_p3 = scmp.lt.s32.totalorder %s3145_s14, %s3145_s14 }
  0x62   :  { %p3152_p4 = por %p3151_p3, %p3150_p2 }
  0x64   :  { %p3153_p5 = pnand %p3152_p4, %p3146_p1 }
  0x66   :  { %3156 = shalt.err (!%p3153_p5)
}
  0x67   :  { %93 = dma.hbm_to_vmem [thread:$0]  %s3912_s6, 2048, %s88_s27, [#allocation13], %s3264_s3, %s3264_s3, %s3265_s20  }
  0x68   :  { %3245 = dma.done.wait [#allocation4], 1024  }
  0x69   :  { %3246 = vsyncadd [#allocation4], 4294966272 }
  0x6a   :  { %3247 = dma.done.wait [#allocation7], 256  }
  0x6b   :  { %3248 = vsyncadd [#allocation7], 4294967040 }
  0x6c   :  { %3249 = dma.done.wait [#allocation10], 16384  }
  0x6d   :  { %3250 = vsyncadd [#allocation10], 4294950912 }
  0x6e   :  { %3251 = dma.done.wait [#allocation13], 2048  }
  0x6f   :  { %3252 = vsyncadd [#allocation13], 4294965248  ;;  %v3269_v0 = vmov 0.0   ;;  %v123_v1 = vld [vmem:[#allocation9 + $0x8] sm:$0xff]  ;;  %v125_v3 = vld [vmem:[#allocation9 + $0x18] sm:$0xff]  ;;  %vm3271_vm0 = vmmov 0  }
  0x70   :  { %272 = vmatprep.mubr.f32.mxu0 %v3269_v0  ;;  %385 = vmatprep.mubr.f32.mxu1 %v3269_v0  ;;  %v127_v2 = vld [vmem:[#allocation9 + $0x28] sm:$0xff]  ;;  %v129_v5 = vld [vmem:[#allocation9 + $0x38] sm:$0xff]  ;;  %v122_v6 = vld [vmem:[#allocation9] sm:$0xff] }
  0x71   :  { %v2212_v4 = vpack.c.bf16 %v127_v2, %v123_v1  ;;  %v126_v7 = vld [vmem:[#allocation9 + $0x20] sm:$0xff]  ;;  %v2244_v8 = vpack.c.bf16 %v129_v5, %v125_v3  ;;  %v124_v10 = vld [vmem:[#allocation9 + $0x10] sm:$0xff]  ;;  %v131_v12 = vld [vmem:[#allocation9 + $0x48] sm:$0xff] }
  0x72   :  { %v2214_v9 = vpack.c.bf16 %v126_v7, %v122_v6  ;;  %v128_v11 = vld [vmem:[#allocation9 + $0x30] sm:$0xff]  ;;  %v135_v14 = vld [vmem:[#allocation9 + $0x68] sm:$0xff]  ;;  %v133_v15 = vld [vmem:[#allocation9 + $0x58] sm:$0xff] }
  0x73   :  { %2213 = vmatprep.subr.bf16.mxu0 %v2212_v4  ;;  %v2246_v13 = vpack.c.bf16 %v128_v11, %v124_v10  ;;  %v137_v16 = vld [vmem:[#allocation9 + $0x78] sm:$0xff]  ;;  %2245 = vmatprep.subr.bf16.mxu1 %v2244_v8  ;;  %v2216_v17 = vpack.c.bf16 %v135_v14, %v131_v12  ;;  %v130_v19 = vld [vmem:[#allocation9 + $0x40] sm:$0xff]  ;;  %v132_v21 = vld [vmem:[#allocation9 + $0x50] sm:$0xff] }
  0x74   :  { %2215 = vmatpush1.bf16.msra.mxu0 %v2214_v9  ;;  %v2248_v18 = vpack.c.bf16 %v137_v16, %v133_v15  ;;  %v134_v20 = vld [vmem:[#allocation9 + $0x60] sm:$0xff]  ;;  %v136_v23 = vld [vmem:[#allocation9 + $0x70] sm:$0xff]  ;;  %v139_v24 = vld [vmem:[#allocation9 + $0x88] sm:$0xff] }
  0x75   :  { %2247 = vmatpush1.bf16.msra.mxu1 %v2246_v13  ;;  %v2218_v22 = vpack.c.bf16 %v134_v20, %v130_v19  ;;  %v143_v25 = vld [vmem:[#allocation9 + $0xa8] sm:$0xff]  ;;  %2217 = vmatprep.subr.bf16.mxu0 %v2216_v17  ;;  %v2250_v26 = vpack.c.bf16 %v136_v23, %v132_v21  ;;  %v141_v28 = vld [vmem:[#allocation9 + $0x98] sm:$0xff]  ;;  %v138_v30 = vld [vmem:[#allocation9 + $0x80] sm:$0xff] }
  0x76   :  { %2249 = vmatprep.subr.bf16.mxu1 %v2248_v18  ;;  %v2220_v27 = vpack.c.bf16 %v143_v25, %v139_v24  ;;  %v145_v29 = vld [vmem:[#allocation9 + $0xb8] sm:$0xff]  ;;  %v142_v32 = vld [vmem:[#allocation9 + $0xa0] sm:$0xff]  ;;  %v140_v33 = vld [vmem:[#allocation9 + $0x90] sm:$0xff] }
  0x77   :  { %v2252_v31 = vpack.c.bf16 %v145_v29, %v141_v28  ;;  %v144_v34 = vld [vmem:[#allocation9 + $0xb0] sm:$0xff]  ;;  %v2222_v35 = vpack.c.bf16 %v142_v32, %v138_v30  ;;  %v147_v36 = vld [vmem:[#allocation9 + $0xc8] sm:$0xff]  ;;  %v149_v38 = vld [vmem:[#allocation9 + $0xd8] sm:$0xff] }
  0x78   :  { %2219 = vmatpush1.bf16.msra.mxu0 %v2218_v22  ;;  %v151_v37 = vld [vmem:[#allocation9 + $0xe8] sm:$0xff]  ;;  %v2254_v39 = vpack.c.bf16 %v144_v34, %v140_v33  ;;  %v153_v41 = vld [vmem:[#allocation9 + $0xf8] sm:$0xff]  ;;  %v146_v42 = vld [vmem:[#allocation9 + $0xc0] sm:$0xff] }
  0x79   :  { %2251 = vmatpush1.bf16.msra.mxu1 %v2250_v26  ;;  %2221 = vmatprep.subr.bf16.mxu0 %v2220_v27  ;;  %v2224_v40 = vpack.c.bf16 %v151_v37, %v147_v36  ;;  %v150_v43 = vld [vmem:[#allocation9 + $0xe0] sm:$0xff]  ;;  %v2256_v44 = vpack.c.bf16 %v153_v41, %v149_v38  ;;  %v148_v45 = vld [vmem:[#allocation9 + $0xd0] sm:$0xff]  ;;  %v155_v47 = vld [vmem:[#allocation9 + $0x108] sm:$0xff] }
  0x7a   :  { %2253 = vmatprep.subr.bf16.mxu1 %v2252_v31  ;;  %v152_v46 = vld [vmem:[#allocation9 + $0xf0] sm:$0xff]  ;;  %v159_v48 = vld [vmem:[#allocation9 + $0x128] sm:$0xff]  ;;  %v157_v49 = vld [vmem:[#allocation9 + $0x118] sm:$0xff]  ;;  %v2226_v51 = vpack.c.bf16 %v150_v43, %v146_v42 }
  0x7b   :  { %v161_v50 = vld [vmem:[#allocation9 + $0x138] sm:$0xff]  ;;  %v2258_v52 = vpack.c.bf16 %v152_v46, %v148_v45  ;;  %v2228_v53 = vpack.c.bf16 %v159_v48, %v155_v47  ;;  %v154_v54 = vld [vmem:[#allocation9 + $0x100] sm:$0xff]  ;;  %v156_v56 = vld [vmem:[#allocation9 + $0x110] sm:$0xff] }
  0x7c   :  { %2223 = vmatpush1.bf16.msra.mxu0 %v2222_v35  ;;  %v158_v55 = vld [vmem:[#allocation9 + $0x120] sm:$0xff]  ;;  %v2260_v57 = vpack.c.bf16 %v161_v50, %v157_v49  ;;  %v160_v58 = vld [vmem:[#allocation9 + $0x130] sm:$0xff]  ;;  %v163_v59 = vld [vmem:[#allocation9 + $0x148] sm:$0xff] }
  0x7d   :  { %2255 = vmatpush1.bf16.msra.mxu1 %v2254_v39  ;;  %2225 = vmatprep.subr.bf16.mxu0 %v2224_v40  ;;  %v167_v60 = vld [vmem:[#allocation9 + $0x168] sm:$0xff]  ;;  %v165_v61 = vld [vmem:[#allocation9 + $0x158] sm:$0xff]  ;;  %v2230_v63 = vpack.c.bf16 %v158_v55, %v154_v54  ;;  %v2262_v1 = vpack.c.bf16 %v160_v58, %v156_v56  ;;  %v162_v3 = vld [vmem:[#allocation9 + $0x140] sm:$0xff] }
  0x7e   :  { %2257 = vmatprep.subr.bf16.mxu1 %v2256_v44  ;;  %v169_v62 = vld [vmem:[#allocation9 + $0x178] sm:$0xff]  ;;  %v2232_v2 = vpack.c.bf16 %v167_v60, %v163_v59  ;;  %v166_v4 = vld [vmem:[#allocation9 + $0x160] sm:$0xff]  ;;  %v164_v5 = vld [vmem:[#allocation9 + $0x150] sm:$0xff] }
  0x7f   :  { %v2264_v6 = vpack.c.bf16 %v169_v62, %v165_v61  ;;  %v168_v7 = vld [vmem:[#allocation9 + $0x170] sm:$0xff]  ;;  %v171_v8 = vld [vmem:[#allocation9 + $0x188] sm:$0xff]  ;;  %v173_v10 = vld [vmem:[#allocation9 + $0x198] sm:$0xff]  ;;  %v2234_v12 = vpack.c.bf16 %v166_v4, %v162_v3 }
  0x80   :  { %2227 = vmatpush1.bf16.msra.mxu0 %v2226_v51  ;;  %v175_v9 = vld [vmem:[#allocation9 + $0x1a8] sm:$0xff]  ;;  %v177_v11 = vld [vmem:[#allocation9 + $0x1b8] sm:$0xff]  ;;  %v2266_v13 = vpack.c.bf16 %v168_v7, %v164_v5  ;;  %v170_v15 = vld [vmem:[#allocation9 + $0x180] sm:$0xff] }
  0x81   :  { %2259 = vmatpush1.bf16.msra.mxu1 %v2258_v52  ;;  %2229 = vmatprep.subr.bf16.mxu0 %v2228_v53  ;;  %v2236_v14 = vpack.c.bf16 %v175_v9, %v171_v8  ;;  %v174_v16 = vld [vmem:[#allocation9 + $0x1a0] sm:$0xff]  ;;  %v172_v17 = vld [vmem:[#allocation9 + $0x190] sm:$0xff]  ;;  %v2268_v18 = vpack.c.bf16 %v177_v11, %v173_v10  ;;  %v179_v20 = vld [vmem:[#allocation9 + $0x1c8] sm:$0xff] }
  0x82   :  { %2261 = vmatprep.subr.bf16.mxu1 %v2260_v57  ;;  %v176_v19 = vld [vmem:[#allocation9 + $0x1b0] sm:$0xff]  ;;  %v183_v21 = vld [vmem:[#allocation9 + $0x1e8] sm:$0xff]  ;;  %v181_v22 = vld [vmem:[#allocation9 + $0x1d8] sm:$0xff]  ;;  %v2238_v24 = vpack.c.bf16 %v174_v16, %v170_v15 }
  0x83   :  { %v185_v23 = vld [vmem:[#allocation9 + $0x1f8] sm:$0xff]  ;;  %v2270_v25 = vpack.c.bf16 %v176_v19, %v172_v17  ;;  %v2240_v26 = vpack.c.bf16 %v183_v21, %v179_v20  ;;  %v178_v27 = vld [vmem:[#allocation9 + $0x1c0] sm:$0xff]  ;;  %v180_v29 = vld [vmem:[#allocation9 + $0x1d0] sm:$0xff] }
  0x84   :  { %2231 = vmatpush1.bf16.msra.mxu0 %v2230_v63  ;;  %v182_v28 = vld [vmem:[#allocation9 + $0x1e0] sm:$0xff]  ;;  %v2272_v30 = vpack.c.bf16 %v185_v23, %v181_v22  ;;  %v184_v31 = vld [vmem:[#allocation9 + $0x1f0] sm:$0xff]  ;;  %v467_v32 = vld [vmem:[#allocation11 + $0x8] sm:$0xff] }
  0x85   :  { %2263 = vmatpush1.bf16.msra.mxu1 %v2262_v1  ;;  %2233 = vmatprep.subr.bf16.mxu0 %v2232_v2  ;;  %v471_v33 = vld [vmem:[#allocation11 + $0x28] sm:$0xff]  ;;  %v469_v34 = vld [vmem:[#allocation11 + $0x18] sm:$0xff]  ;;  %v2242_v36 = vpack.c.bf16 %v182_v28, %v178_v27  ;;  %v2274_v37 = vpack.c.bf16 %v184_v31, %v180_v29  ;;  %v466_v39 = vld [vmem:[#allocation11] sm:$0xff] }
  0x86   :  { %2265 = vmatprep.subr.bf16.mxu1 %v2264_v6  ;;  %v473_v35 = vld [vmem:[#allocation11 + $0x38] sm:$0xff]  ;;  %v3429_v38 = vpack.c.bf16 %v471_v33, %v467_v32  ;;  %v470_v40 = vld [vmem:[#allocation11 + $0x20] sm:$0xff]  ;;  %v468_v42 = vld [vmem:[#allocation11 + $0x10] sm:$0xff] }
  0x87   :  { %v3431_v41 = vpack.c.bf16 %v473_v35, %v469_v34  ;;  %v472_v43 = vld [vmem:[#allocation11 + $0x30] sm:$0xff]  ;;  %v475_v44 = vld [vmem:[#allocation11 + $0x48] sm:$0xff]  ;;  %v3433_v47 = vpack.c.bf16 %v470_v40, %v466_v39  ;;  %v477_v48 = vld [vmem:[#allocation11 + $0x58] sm:$0xff] }
  0x88   :  { %2235 = vmatpush1.bf16.msra.mxu0 %v2234_v12  ;;  %v479_v45 = vld [vmem:[#allocation11 + $0x68] sm:$0xff]  ;;  %v114_v46 = vld [vmem:[#allocation3] sm:$0xff]  ;;  %v481_v49 = vld [vmem:[#allocation11 + $0x78] sm:$0xff]  ;;  %v3436_v50 = vpack.c.bf16 %v472_v43, %v468_v42 }
  0x89   :  { %2267 = vmatpush1.bf16.msra.mxu1 %v2266_v13  ;;  %2237 = vmatprep.subr.bf16.mxu0 %v2236_v14  ;;  %v474_v51 = vld [vmem:[#allocation11 + $0x40] sm:$0xff]  ;;  %v3439_v53 = vpack.c.bf16 %v479_v45, %v475_v44  ;;  %v476_v54 = vld [vmem:[#allocation11 + $0x50] sm:$0xff]  ;;  %v3441_v56 = vpack.c.bf16 %v481_v49, %v477_v48  ;;  %v483_v57 = vld [vmem:[#allocation11 + $0x88] sm:$0xff] }
  0x8a   :  { %2269 = vmatprep.subr.bf16.mxu1 %v2268_v18  ;;  %v478_v52 = vld [vmem:[#allocation11 + $0x60] sm:$0xff]  ;;  %v480_v55 = vld [vmem:[#allocation11 + $0x70] sm:$0xff]  ;;  %v487_v58 = vld [vmem:[#allocation11 + $0xa8] sm:$0xff] }
  0x8b   :  { %v115_v59 = vld [vmem:[#allocation3 + $0x8] sm:$0xff]  ;;  %v3444_v60 = vpack.c.bf16 %v478_v52, %v474_v51  ;;  %v3448_v63 = vpack.c.bf16 %v480_v55, %v476_v54  ;;  %v482_v1 = vld [vmem:[#allocation11 + $0x80] sm:$0xff]  ;;  %v3452_v3 = vpack.c.bf16 %v487_v58, %v483_v57  ;;  %v484_v4 = vld [vmem:[#allocation11 + $0x90] sm:$0xff] }
  0x8c   :  { %2239 = vmatpush1.bf16.msra.mxu0 %v2238_v24  ;;  %v485_v61 = vld [vmem:[#allocation11 + $0x98] sm:$0xff]  ;;  %v486_v2 = vld [vmem:[#allocation11 + $0xa0] sm:$0xff]  ;;  %v488_v5 = vld [vmem:[#allocation11 + $0xb0] sm:$0xff] }
  0x8d   :  { %2271 = vmatpush1.bf16.msra.mxu1 %v2270_v25  ;;  %2241 = vmatprep.subr.bf16.mxu0 %v2240_v26  ;;  %v489_v62 = vld [vmem:[#allocation11 + $0xb8] sm:$0xff]  ;;  %v491_v7 = vld [vmem:[#allocation11 + $0xc8] sm:$0xff]  ;;  %v116_v9 = vld [vmem:[#allocation3 + $0x10] sm:$0xff]  ;;  %v3458_v10 = vpack.c.bf16 %v486_v2, %v482_v1  ;;  %v3462_v13 = vpack.c.bf16 %v488_v5, %v484_v4 }
  0x8e   :  { %2273 = vmatprep.subr.bf16.mxu1 %v2272_v30  ;;  %v3455_v6 = vpack.c.bf16 %v489_v62, %v485_v61  ;;  %v495_v8 = vld [vmem:[#allocation11 + $0xe8] sm:$0xff]  ;;  %v493_v11 = vld [vmem:[#allocation11 + $0xd8] sm:$0xff]  ;;  %v490_v14 = vld [vmem:[#allocation11 + $0xc0] sm:$0xff] }
  0x8f   :  { %v497_v12 = vld [vmem:[#allocation11 + $0xf8] sm:$0xff]  ;;  %v494_v15 = vld [vmem:[#allocation11 + $0xe0] sm:$0xff]  ;;  %v3466_v16 = vpack.c.bf16 %v495_v8, %v491_v7  ;;  %v492_v17 = vld [vmem:[#allocation11 + $0xd0] sm:$0xff] }
  0x90   :  { %2243 = vmatpush1.bf16.msra.mxu0 %v2242_v36  ;;  %v496_v18 = vld [vmem:[#allocation11 + $0xf0] sm:$0xff]  ;;  %v3469_v19 = vpack.c.bf16 %v497_v12, %v493_v11  ;;  %v499_v20 = vld [vmem:[#allocation11 + $0x108] sm:$0xff]  ;;  %v3472_v23 = vpack.c.bf16 %v494_v15, %v490_v14  ;;  %v501_v24 = vld [vmem:[#allocation11 + $0x118] sm:$0xff] }
  0x91   :  { %2275 = vmatpush1.bf16.msra.mxu1 %v2274_v37  ;;  %2277 = vmatprep.subr.bf16.mxu0 %v3429_v38  ;;  %v503_v21 = vld [vmem:[#allocation11 + $0x128] sm:$0xff]  ;;  %v505_v25 = vld [vmem:[#allocation11 + $0x138] sm:$0xff]  ;;  %v3476_v26 = vpack.c.bf16 %v496_v18, %v492_v17  ;;  %v498_v27 = vld [vmem:[#allocation11 + $0x100] sm:$0xff] }
  0x92   :  { %2309 = vmatprep.subr.bf16.mxu1 %v3431_v41  ;;  %v117_v22 = vld [vmem:[#allocation3 + $0x18] sm:$0xff]  ;;  %v502_v28 = vld [vmem:[#allocation11 + $0x120] sm:$0xff]  ;;  %v3480_v29 = vpack.c.bf16 %v503_v21, %v499_v20  ;;  %v500_v30 = vld [vmem:[#allocation11 + $0x110] sm:$0xff]  ;;  %v3483_v32 = vpack.c.bf16 %v505_v25, %v501_v24 }
  0x93   :  { %273 = vmatmul.mubr.f32.vlgmr.msra.gmra.mrb[0].mxu0 %v114_v46  ;;  %v504_v31 = vld [vmem:[#allocation11 + $0x130] sm:$0xff]  ;;  %v507_v33 = vld [vmem:[#allocation11 + $0x148] sm:$0xff]  ;;  %v3486_v36 = vpack.c.bf16 %v502_v28, %v498_v27  ;;  %v509_v37 = vld [vmem:[#allocation11 + $0x158] sm:$0xff] }
  0x94   :  { %386 = vmatmul.mubr.f32.vlgmr.msra.gmra.mrb[0].mxu1 %v114_v46  ;;  %2279 = vmatpush1.bf16.msra.mxu0 %v3433_v47  ;;  %v511_v34 = vld [vmem:[#allocation11 + $0x168] sm:$0xff]  ;;  %v118_v35 = vld [vmem:[#allocation3 + $0x20] sm:$0xff]  ;;  %v513_v39 = vld [vmem:[#allocation11 + $0x178] sm:$0xff]  ;;  %v3490_v40 = vpack.c.bf16 %v504_v31, %v500_v30 }
  0x95   :  { %2311 = vmatpush1.bf16.msra.mxu1 %v3436_v50  ;;  %278 = vmatprep.mubr.f32.mxu0 %v3269_v0  ;;  %v506_v42 = vld [vmem:[#allocation11 + $0x140] sm:$0xff]  ;;  %v3494_v44 = vpack.c.bf16 %v511_v34, %v507_v33  ;;  %v508_v45 = vld [vmem:[#allocation11 + $0x150] sm:$0xff]  ;;  %v3497_v48 = vpack.c.bf16 %v513_v39, %v509_v37  ;;  %v515_v49 = vld [vmem:[#allocation11 + $0x188] sm:$0xff]  ;;  %v3270_v34 = vmov 0.0|0.0  }
  0x96   :  { %391 = vmatprep.mubr.f32.mxu1 %v3269_v0  ;;  %2281 = vmatprep.subr.bf16.mxu0 %v3439_v53  ;;  %v510_v43 = vld [vmem:[#allocation11 + $0x160] sm:$0xff]  ;;  %v512_v46 = vld [vmem:[#allocation11 + $0x170] sm:$0xff]  ;;  %v519_v51 = vld [vmem:[#allocation11 + $0x1a8] sm:$0xff] }
  0x97   :  { %279 = vmatmul.mubr.f32.gmra.mrb[2].mxu0 %v115_v59  ;;  %2313 = vmatprep.subr.bf16.mxu1 %v3441_v56  ;;  %v119_v52 = vld [vmem:[#allocation3 + $0x28] sm:$0xff]  ;;  %v3500_v54 = vpack.c.bf16 %v510_v43, %v506_v42  ;;  %v3504_v58 = vpack.c.bf16 %v512_v46, %v508_v45  ;;  %v518_v61 = vld [vmem:[#allocation11 + $0x1a0] sm:$0xff]  ;;  %v3508_v62 = vpack.c.bf16 %v519_v51, %v515_v49  ;;  %v516_v1 = vld [vmem:[#allocation11 + $0x190] sm:$0xff] }
  0x98   :  { %392 = vmatmul.mubr.f32.gmra.mrb[2].mxu1 %v115_v59  ;;  %2283 = vmatpush1.bf16.msra.mxu0 %v3444_v60  ;;  %v517_v55 = vld [vmem:[#allocation11 + $0x198] sm:$0xff]  ;;  %v514_v59 = vld [vmem:[#allocation11 + $0x180] sm:$0xff]  ;;  %v520_v2 = vld [vmem:[#allocation11 + $0x1b0] sm:$0xff] }
  0x99   :  { %2315 = vmatpush1.bf16.msra.mxu1 %v3448_v63  ;;  %284 = vmatprep.mubr.f32.mxu0 %v3269_v0  ;;  %v521_v57 = vld [vmem:[#allocation11 + $0x1b8] sm:$0xff]  ;;  %v523_v5 = vld [vmem:[#allocation11 + $0x1c8] sm:$0xff]  ;;  %v120_v8 = vld [vmem:[#allocation3 + $0x30] sm:$0xff]  ;;  %v3518_v14 = vpack.c.bf16 %v520_v2, %v516_v1 }
  0x9a   :  { %397 = vmatprep.mubr.f32.mxu1 %v3269_v0  ;;  %2285 = vmatprep.subr.bf16.mxu0 %v3452_v3  ;;  %v3511_v4 = vpack.c.bf16 %v521_v57, %v517_v55  ;;  %v527_v7 = vld [vmem:[#allocation11 + $0x1e8] sm:$0xff]  ;;  %v525_v11 = vld [vmem:[#allocation11 + $0x1d8] sm:$0xff]  ;;  %v522_v15 = vld [vmem:[#allocation11 + $0x1c0] sm:$0xff] }
  0x9b   :  { %285 = vmatmul.mubr.f32.gmra.mrb[4].mxu0 %v116_v9  ;;  %2317 = vmatprep.subr.bf16.mxu1 %v3455_v6  ;;  %v529_v12 = vld [vmem:[#allocation11 + $0x1f8] sm:$0xff]  ;;  %v526_v17 = vld [vmem:[#allocation11 + $0x1e0] sm:$0xff]  ;;  %v3522_v18 = vpack.c.bf16 %v527_v7, %v523_v5  ;;  %v524_v20 = vld [vmem:[#allocation11 + $0x1d0] sm:$0xff] }
  0x9c   :  { %398 = vmatmul.mubr.f32.gmra.mrb[4].mxu1 %v116_v9  ;;  %2287 = vmatpush1.bf16.msra.mxu0 %v3458_v10  ;;  %v3514_v9 = vpack.c.bf16 %v518_v61, %v514_v59  ;;  %v528_v21 = vld [vmem:[#allocation11 + $0x1f0] sm:$0xff]  ;;  %v121_v24 = vld [vmem:[#allocation3 + $0x38] sm:$0xff]  ;;  %v3528_v25 = vpack.c.bf16 %v526_v17, %v522_v15  ;;  %v707_v30 = vld [vmem:[#allocation12] sm:$0xff]  ;;  %v188_v15 = vlaneseq }
  0x9d   :  { %2319 = vmatpush1.bf16.msra.mxu1 %v3462_v13  ;;  %290 = vmatprep.mubr.f32.mxu0 %v3269_v0  ;;  %v3532_v27 = vpack.c.bf16 %v528_v21, %v524_v20  ;;  %v534_v28 = vld [vmem:[#allocation6] sm:$0xff]  ;;  %v708_v31 = vld [vmem:[#allocation12 + $0x8] sm:$0xff]  ;;  %v710_v37 = vld [vmem:[#allocation12 + $0x18] sm:$0xff] }
  0x9e   :  { %403 = vmatprep.mubr.f32.mxu1 %v3269_v0  ;;  %2289 = vmatprep.subr.bf16.mxu0 %v3466_v16  ;;  %v2341_v33 = vpack.c.bf16 %v708_v31, %v707_v30  ;;  %v711_v42 = vld [vmem:[#allocation12 + $0x20] sm:$0xff]  ;;  %v712_v43 = vld [vmem:[#allocation12 + $0x28] sm:$0xff]  ;;  %v713_v46 = vld [vmem:[#allocation12 + $0x30] sm:$0xff]  ;;  %v189_v17 = vshrl.u32 %v188_v15, 7 }
  0x9f   :  { %291 = vmatmul.mubr.f32.gmra.mrb[6].mxu0 %v117_v22  ;;  %2321 = vmatprep.subr.bf16.mxu1 %v3469_v19  ;;  %v2347_v45 = vpack.c.bf16 %v712_v43, %v711_v42  ;;  %v714_v49 = vld [vmem:[#allocation12 + $0x38] sm:$0xff]  ;;  %v716_v55 = vld [vmem:[#allocation12 + $0x48] sm:$0xff]  ;;  %v717_v59 = vld [vmem:[#allocation12 + $0x50] sm:$0xff] }
  0xa0   :  { %404 = vmatmul.mubr.f32.gmra.mrb[6].mxu1 %v117_v22  ;;  %2291 = vmatpush1.bf16.msra.mxu0 %v3472_v23  ;;  %v3525_v22 = vpack.c.bf16 %v529_v12, %v525_v11  ;;  %v2350_v51 = vpack.c.bf16 %v714_v49, %v713_v46  ;;  %v718_v61 = vld [vmem:[#allocation12 + $0x58] sm:$0xff]  ;;  %v719_v2 = vld [vmem:[#allocation12 + $0x60] sm:$0xff]  ;;  %v720_v5 = vld [vmem:[#allocation12 + $0x68] sm:$0xff]  ;;  %v190_v20 = vsub.s32 0, %v189_v17  ;;  %v202_v49 = vsub.s32 3, %v189_v17 }
  0xa1   :  { %2323 = vmatpush1.bf16.msra.mxu1 %v3476_v26  ;;  %296 = vmatprep.mubr.f32.mxu0 %v3269_v0  ;;  %v2356_v1 = vpack.c.bf16 %v718_v61, %v717_v59  ;;  %v2359_v7 = vpack.c.bf16 %v720_v5, %v719_v2  ;;  %v722_v11 = vld [vmem:[#allocation12 + $0x78] sm:$0xff]  ;;  %v186_v21 = vld [vmem:[%s3911_s5] sm:$0xf] }
  0xa2   :  { %409 = vmatprep.mubr.f32.mxu1 %v3269_v0  ;;  %2293 = vmatprep.subr.bf16.mxu0 %v3480_v29 }
  0xa3   :  { %297 = vmatmul.mubr.f32.gmra.mrb[8].mxu0 %v118_v35  ;;  %2325 = vmatprep.subr.bf16.mxu1 %v3483_v32 }
  0xa4   :  { %410 = vmatmul.mubr.f32.gmra.mrb[8].mxu1 %v118_v35  ;;  %2295 = vmatpush1.bf16.msra.mxu0 %v3486_v36  ;;  %v709_v35 = vld [vmem:[#allocation12 + $0x10] sm:$0xff] }
  0xa5   :  { %2327 = vmatpush1.bf16.msra.mxu1 %v3490_v40  ;;  %302 = vmatprep.mubr.f32.mxu0 %v3269_v0  ;;  %v2344_v39 = vpack.c.bf16 %v710_v37, %v709_v35 }
  0xa6   :  { %415 = vmatprep.mubr.f32.mxu1 %v3269_v0  ;;  %2297 = vmatprep.subr.bf16.mxu0 %v3494_v44 }
  0xa7   :  { %303 = vmatmul.mubr.f32.gmra.mrb[10].mxu0 %v119_v52  ;;  %2329 = vmatprep.subr.bf16.mxu1 %v3497_v48 }
  0xa8   :  { %416 = vmatmul.mubr.f32.gmra.mrb[10].mxu1 %v119_v52  ;;  %2299 = vmatpush1.bf16.msra.mxu0 %v3500_v54  ;;  %v715_v52 = vld [vmem:[#allocation12 + $0x40] sm:$0xff] }
  0xa9   :  { %2331 = vmatpush1.bf16.msra.mxu1 %v3504_v58  ;;  %308 = vmatprep.mubr.f32.mxu0 %v3269_v0  ;;  %v2353_v57 = vpack.c.bf16 %v716_v55, %v715_v52  ;;  %v3573_v52 = vrot.slane %v186_v21, %v202_v49 }
  0xaa   :  { %421 = vmatprep.mubr.f32.mxu1 %v3269_v0  ;;  %2301 = vmatprep.subr.bf16.mxu0 %v3508_v62 }
  0xab   :  { %309 = vmatmul.mubr.f32.gmra.mrb[12].mxu0 %v120_v8  ;;  %2333 = vmatprep.subr.bf16.mxu1 %v3511_v4 }
  0xac   :  { %422 = vmatmul.mubr.f32.gmra.mrb[12].mxu1 %v120_v8  ;;  %2303 = vmatpush1.bf16.msra.mxu0 %v3514_v9  ;;  %v721_v8 = vld [vmem:[#allocation12 + $0x70] sm:$0xff] }
  0xad   :  { %2335 = vmatpush1.bf16.msra.mxu1 %v3518_v14  ;;  %314 = vmatprep.mubr.f32.mxu0 %v3269_v0  ;;  %v2362_v12 = vpack.c.bf16 %v722_v11, %v721_v8  ;;  %v535_v11 = vld [vmem:[#allocation8] sm:$0xff] }
  0xae   :  { %427 = vmatprep.mubr.f32.mxu1 %v3269_v0  ;;  %2305 = vmatprep.subr.bf16.mxu0 %v3522_v18 }
  0xaf   :  { %315 = vmatmul.mubr.f32.gmra.mrb[14].mxu0 %v121_v24  ;;  %2337 = vmatprep.subr.bf16.mxu1 %v3525_v22 }
  0xb0   :  { %428 = vmatmul.mubr.f32.gmra.mrb[14].mxu1 %v121_v24  ;;  %2307 = vmatpush1.bf16.msra.mxu0 %v3528_v25  ;;  %v194_v24 = vsub.s32 1, %v189_v17 }
  0xb1   :  { %2339 = vmatpush1.bf16.msra.mxu1 %v3532_v27  ;;  %600 = vmatprep.mubr.f32.mxu0 %v3269_v0 }
  0xb2   :  { %671 = vmatprep.mubr.f32.mxu1 %v3269_v0  ;;  %2397 = vmatprep.subr.bf16.mxu1 %v3431_v41  ;;  %v3566_v30 = vrot.slane %v186_v21, %v194_v24 }
  0xb3   :  { %601 = vmatmul.mubr.f32.vlgmr.msra.gmra.mrb[0].mxu0 %v534_v28  ;;  %2340 = vmatprep.subr.bf16.mxu0 %v3270_v34 }
  0xb4   :  { %672 = vmatmul.mubr.f32.vlgmr.msra.gmra.mrb[0].mxu1 %v534_v28  ;;  %2342 = vmatpush3.bf16.msra.mxu0 %v2341_v33  ;;  %v3564_v28 = vrot.slane %v186_v21, %v190_v20  ;;  %v198_v33 = vsub.s32 2, %v189_v17 }
  0xb5   :  { %2399 = vmatpush1.bf16.msra.mxu1 %v3436_v50  ;;  %954 = vmatprep.mubr.f32.mxu1 %v3269_v0 }
  0xb6   :  { %2401 = vmatprep.subr.bf16.mxu1 %v3441_v56  ;;  %2343 = vmatprep.subr.bf16.mxu0 %v3270_v34 }
  0xb7   :  { %2209 = vmatprep.mubr.msk.f32.mxu0 %vm3271_vm0, %v3269_v0 }
  0xb8   :  { %2345 = vmatpush3.bf16.msra.mxu0 %v2344_v39 }
  0xb9   :  { %2403 = vmatpush1.bf16.msra.mxu1 %v3448_v63  ;;  %2346 = vmatprep.subr.bf16.mxu0 %v3270_v34 }
  0xba   :  { %2405 = vmatprep.subr.bf16.mxu1 %v3455_v6 }
  0xbc   :  { %2348 = vmatpush3.bf16.msra.mxu0 %v2347_v45  ;;  %v3570_v45 = vrot.slane %v186_v21, %v198_v33 }
  0xbd   :  { %2407 = vmatpush1.bf16.msra.mxu1 %v3462_v13  ;;  %2349 = vmatprep.subr.bf16.mxu0 %v3270_v34 }
  0xbe   :  { %2409 = vmatprep.subr.bf16.mxu1 %v3469_v19 }
  0xc0   :  { %2351 = vmatpush3.bf16.msra.mxu0 %v2350_v51 }
  0xc1   :  { %2411 = vmatpush1.bf16.msra.mxu1 %v3476_v26  ;;  %2352 = vmatprep.subr.bf16.mxu0 %v3270_v34 }
  0xc2   :  { %2413 = vmatprep.subr.bf16.mxu1 %v3483_v32 }
  0xc4   :  { %2354 = vmatpush3.bf16.msra.mxu0 %v2353_v57 }
  0xc5   :  { %2415 = vmatpush1.bf16.msra.mxu1 %v3490_v40  ;;  %2355 = vmatprep.subr.bf16.mxu0 %v3270_v34 }
  0xc6   :  { %2417 = vmatprep.subr.bf16.mxu1 %v3497_v48 }
  0xc8   :  { %2357 = vmatpush3.bf16.msra.mxu0 %v2356_v1 }
  0xc9   :  { %2419 = vmatpush1.bf16.msra.mxu1 %v3504_v58  ;;  %2358 = vmatprep.subr.bf16.mxu0 %v3270_v34 }
  0xca   :  { %2421 = vmatprep.subr.bf16.mxu1 %v3511_v4 }
  0xcc   :  { %2360 = vmatpush3.bf16.msra.mxu0 %v2359_v7 }
  0xcd   :  { %2423 = vmatpush1.bf16.msra.mxu1 %v3518_v14  ;;  %2361 = vmatprep.subr.bf16.mxu0 %v3270_v34 }
  0xce   :  { %2425 = vmatprep.subr.bf16.mxu1 %v3525_v22 }
  0xd0   :  { %2363 = vmatpush3.bf16.msra.mxu0 %v2362_v12 }
  0xd1   :  { %2427 = vmatpush1.bf16.msra.mxu1 %v3532_v27  ;;  %2365 = vmatprep.subr.bf16.mxu0 %v3429_v38 }
  0xd2   :  { %2461 = vmatprep.subr.bf16.mxu1 %v3431_v41 }
 0x186   :  { %v602_v31 = vpop.f32.mrb[0].mxu0 }
 0x187   :  { %v2812_v35 = vadd.f32 %v602_v31, %v3564_v28  ;;  %v673_v34 = vpop.f32.mrb[0].mxu1  ;;  %v604_v37 = vpop.f32.mrb[1].mxu0 }
 0x188   :  { %v2813_v39 = vadd.f32 %v604_v37, %v3566_v30  ;;  %v675_v42 = vpop.f32.mrb[1].mxu1  ;;  %v2828_v51 = vadd.f32 %v673_v34, %v3570_v45 }
 0x189   :  { %v2135_v43 = vmul.f32 -1.442695, %v2812_v35  ;;  %v2829_v57 = vadd.f32 %v675_v42, %v3573_v52  ;;  %v2138_v35 = vld [vmem:[%s3913_s7] ss:$0 sm:$0xff]  ;;  %s3272_s7 = smov [#allocation15]  }
 0x18a   :  { %v2136_v46 = vmul.f32 -1.442695, %v2813_v39  ;;  %v2137_v55 = vmul.f32 -1.442695, %v2828_v51  ;;  %s2085_s15 = sshll.u32 %s3272_s7, 4  ;;  %s2086_s15 = int_to_ptr.vmem [resolvable:$true] %s2085_s15 }
 0x18b   :  { %2893 = vpow2.f32 %v2135_v43  ;;  %s3157_s16 = scalar_lea.vmem %s2086_s15, 128  ;;  %p3162_p7 = scmp.lt.s32.totalorder %s2086_s15, %s2086_s15 }
 0x18c   :  { %2895 = vpow2.f32 %v2136_v46  ;;  %p3158_p6 = scmp.ne.s32.totalorder %s2086_s15, %s3157_s16  ;;  %p3163_p8 = scmp.lt.s32.totalorder %s3157_s16, %s3157_s16 }
 0x18d   :  { %2897 = vpow2.f32 %v2137_v55 }
 0x18e   :  { %2899 = vtanh.f32 %v2829_v57  ;;  %p3164_p9 = por %p3163_p8, %p3162_p7 }
 0x190   :  { %p3165_p10 = pnand %p3164_p9, %p3158_p6 }
 0x195   :  { %v2894_v59 = vpop.eup %2893 }
 0x196   :  { %v691_v61 = vadd.f32 1.0, %v2894_v59  ;;  %v2896_v1 = vpop.eup %2895 }
 0x197   :  { %v692_v2 = vadd.f32 1.0, %v2896_v1  ;;  %v2898_v5 = vpop.eup %2897 }
 0x198   :  { %2901 = vrcp.f32 %v691_v61  ;;  %v2900_v7 = vpop.eup %2899  ;;  %v693_v17 = vadd.f32 1.0, %v2898_v5 }
 0x199   :  { %2903 = vrcp.f32 %v692_v2 }
 0x19a   :  { %2905 = vrcp.f32 %v693_v17 }
 0x1a2   :  { %v2902_v8 = vpop.eup %2901 }
 0x1a3   :  { %v702_v12 = vmul.f32 %v2902_v8, %v2900_v7  ;;  %v2904_v15 = vpop.eup %2903 }
 0x1a4   :  { %v701_v20 = vmul.f32 %v2904_v15, %v535_v11  ;;  %v2906_v24 = vpop.eup %2905 }
 0x1a6   :  { %v3576_v21 = vadd.f32 %v702_v12, %v701_v20 }
 0x1a8   :  { %2907 = vtanh.f32 %v3576_v21 }
 0x1b2   :  { %v2908_v31 = vpop.eup %2907 }
 0x1b3   :  { %v705_v33 = vmul.f32 %v2908_v31, %v2906_v24 }
 0x1b5   :  { %706 = vst [vmem:[#allocation14] sm:$0xff] %v705_v33  ;;  %2210 = vmatmul.mubr.f32.vlgmr.msra.gmra.mrb[16].mxu0 %v705_v33  ;;  %955 = vmatmul.mubr.f32.vlgmr.msra.gmra.mrb[2].mxu1 %v705_v33 }
 0x1b6   :  { %2367 = vmatpush1.bf16.msra.mxu0 %v3433_v47  ;;  %883 = vmatprep.mubr.f32.mxu0 %v3269_v0 }
 0x1b7   :  { %2369 = vmatprep.subr.bf16.mxu0 %v3439_v53  ;;  %2463 = vmatpush1.bf16.msra.mxu1 %v3436_v50 }
 0x1b8   :  { %2465 = vmatprep.subr.bf16.mxu1 %v3441_v56  ;;  %1133 = vmatprep.mubr.f32.mxu1 %v3269_v0 }
 0x1ba   :  { %2371 = vmatpush1.bf16.msra.mxu0 %v3444_v60 }
 0x1bb   :  { %2373 = vmatprep.subr.bf16.mxu0 %v3452_v3  ;;  %2467 = vmatpush1.bf16.msra.mxu1 %v3448_v63 }
 0x1bc   :  { %2469 = vmatprep.subr.bf16.mxu1 %v3455_v6 }
 0x1be   :  { %2375 = vmatpush1.bf16.msra.mxu0 %v3458_v10 }
 0x1bf   :  { %2377 = vmatprep.subr.bf16.mxu0 %v3466_v16  ;;  %2471 = vmatpush1.bf16.msra.mxu1 %v3462_v13 }
 0x1c0   :  { %2473 = vmatprep.subr.bf16.mxu1 %v3469_v19 }
 0x1c2   :  { %2379 = vmatpush1.bf16.msra.mxu0 %v3472_v23 }
 0x1c3   :  { %2381 = vmatprep.subr.bf16.mxu0 %v3480_v29  ;;  %2475 = vmatpush1.bf16.msra.mxu1 %v3476_v26 }
 0x1c4   :  { %2477 = vmatprep.subr.bf16.mxu1 %v3483_v32 }
 0x1c6   :  { %2383 = vmatpush1.bf16.msra.mxu0 %v3486_v36 }
 0x1c7   :  { %2385 = vmatprep.subr.bf16.mxu0 %v3494_v44  ;;  %2479 = vmatpush1.bf16.msra.mxu1 %v3490_v40 }
 0x1c8   :  { %2481 = vmatprep.subr.bf16.mxu1 %v3497_v48 }
 0x1ca   :  { %2387 = vmatpush1.bf16.msra.mxu0 %v3500_v54 }
 0x1cb   :  { %2389 = vmatprep.subr.bf16.mxu0 %v3508_v62  ;;  %2483 = vmatpush1.bf16.msra.mxu1 %v3504_v58 }
 0x1cc   :  { %2485 = vmatprep.subr.bf16.mxu1 %v3511_v4 }
 0x1ce   :  { %2391 = vmatpush1.bf16.msra.mxu0 %v3514_v9 }
 0x1cf   :  { %2393 = vmatprep.subr.bf16.mxu0 %v3522_v18  ;;  %2487 = vmatpush1.bf16.msra.mxu1 %v3518_v14 }
 0x1d0   :  { %2489 = vmatprep.subr.bf16.mxu1 %v3525_v22 }
 0x1d2   :  { %2395 = vmatpush1.bf16.msra.mxu0 %v3528_v25 }
 0x1d3   :  { %2429 = vmatprep.subr.bf16.mxu0 %v3429_v38  ;;  %2491 = vmatpush1.bf16.msra.mxu1 %v3532_v27 }
 0x1d4   :  { %2525 = vmatprep.subr.bf16.mxu1 %v3431_v41 }
 0x1d5   :  { %884 = vmatmul.mubr.f32.vlgmr.msra.gmra.mrb[2].mxu0 %v705_v33 }
 0x1d6   :  { %2431 = vmatpush1.bf16.msra.mxu0 %v3433_v47  ;;  %1062 = vmatprep.mubr.f32.mxu0 %v3269_v0 }
 0x1d7   :  { %2433 = vmatprep.subr.bf16.mxu0 %v3439_v53 }
 0x1da   :  { %2435 = vmatpush1.bf16.msra.mxu0 %v3444_v60 }
 0x1db   :  { %2437 = vmatprep.subr.bf16.mxu0 %v3452_v3 }
 0x1de   :  { %2439 = vmatpush1.bf16.msra.mxu0 %v3458_v10 }
 0x1df   :  { %2441 = vmatprep.subr.bf16.mxu0 %v3466_v16 }
 0x1e2   :  { %2443 = vmatpush1.bf16.msra.mxu0 %v3472_v23 }
 0x1e3   :  { %2445 = vmatprep.subr.bf16.mxu0 %v3480_v29 }
 0x1e6   :  { %2447 = vmatpush1.bf16.msra.mxu0 %v3486_v36 }
 0x1e7   :  { %2449 = vmatprep.subr.bf16.mxu0 %v3494_v44 }
 0x1ea   :  { %2451 = vmatpush1.bf16.msra.mxu0 %v3500_v54 }
 0x1eb   :  { %2453 = vmatprep.subr.bf16.mxu0 %v3508_v62 }
 0x1ee   :  { %2455 = vmatpush1.bf16.msra.mxu0 %v3514_v9 }
 0x1ef   :  { %2457 = vmatprep.subr.bf16.mxu0 %v3522_v18 }
 0x1f2   :  { %2459 = vmatpush1.bf16.msra.mxu0 %v3528_v25 }
 0x1f3   :  { %2493 = vmatprep.subr.bf16.mxu0 %v3429_v38 }
 0x288   :  { %v796_v34 = vpop.f32.mrb[16].mxu0  ;;  %v956_v37 = vpop.f32.mrb[2].mxu1 }
 0x289   :  { %v3633_v39 = vadd.f32 %v2138_v35, %v796_v34  ;;  %v2211_v42 = vpop.f32.mrb[17].mxu0  ;;  %v958_v43 = vpop.f32.mrb[3].mxu1  ;;  %v2830_v61 = vadd.f32 %v956_v37, %v3570_v45 }
 0x28a   :  { %v2831_v2 = vadd.f32 %v958_v43, %v3573_v52 }
 0x28b   :  { %800 = vmax.xlane.f32.xlu0 %v3633_v39  ;;  %v2141_v1 = vmul.f32 -1.442695, %v2830_v61 }
 0x2a8   :  { %v885_v46 = vpop.f32.mrb[2].mxu0 }
 0x2a9   :  { %v2814_v49 = vadd.f32 %v885_v46, %v3564_v28  ;;  %v887_v51 = vpop.f32.mrb[3].mxu0 }
 0x2aa   :  { %v2815_v55 = vadd.f32 %v887_v51, %v3566_v30 }
 0x2ab   :  { %v2139_v57 = vmul.f32 -1.442695, %v2814_v49 }
 0x2ac   :  { %v2140_v59 = vmul.f32 -1.442695, %v2815_v55 }
 0x2ad   :  { %2909 = vpow2.f32 %v2139_v57 }
 0x2ae   :  { %2911 = vpow2.f32 %v2140_v59 }
 0x2af   :  { %2913 = vpow2.f32 %v2141_v1 }
 0x2b0   :  { %2915 = vtanh.f32 %v2831_v2 }
 0x2b7   :  { %v2910_v5 = vpop.eup %2909 }
 0x2b8   :  { %v2912_v7 = vpop.eup %2911  ;;  %v974_v8 = vadd.f32 1.0, %v2910_v5 }
 0x2b9   :  { %v975_v11 = vadd.f32 1.0, %v2912_v7  ;;  %v2914_v12 = vpop.eup %2913 }
 0x2ba   :  { %2917 = vrcp.f32 %v974_v8  ;;  %v2916_v15 = vpop.eup %2915  ;;  %v976_v24 = vadd.f32 1.0, %v2914_v12 }
 0x2bb   :  { %2919 = vrcp.f32 %v975_v11 }
 0x2bc   :  { %2921 = vrcp.f32 %v976_v24 }
 0x2c4   :  { %v2918_v17 = vpop.eup %2917 }
 0x2c5   :  { %v2920_v20 = vpop.eup %2919  ;;  %v985_v31 = vmul.f32 %v2918_v17, %v2916_v15 }
 0x2c6   :  { %v984_v33 = vmul.f32 %v2920_v20, %v3576_v21  ;;  %v2922_v34 = vpop.eup %2921 }
 0x2c8   :  { %v3641_v35 = vadd.f32 %v985_v31, %v984_v33 }
 0x2ca   :  { %2923 = vtanh.f32 %v3641_v35 }
 0x2d4   :  { %v2924_v37 = vpop.eup %2923 }
 0x2d5   :  { %v988_v42 = vmul.f32 %v2924_v37, %v2922_v34 }
 0x2d7   :  { %990 = vst [vmem:[#allocation14 + $0x8] sm:$0xff] %v988_v42  ;;  %1063 = vmatmul.mubr.f32.vlgmr.msra.gmra.mrb[4].mxu0 %v988_v42  ;;  %1134 = vmatmul.mubr.f32.vlgmr.msra.gmra.mrb[4].mxu1 %v988_v42 }
 0x2d8   :  { %2495 = vmatpush1.bf16.msra.mxu0 %v3433_v47  ;;  %2527 = vmatpush1.bf16.msra.mxu1 %v3436_v50 }
 0x2d9   :  { %2497 = vmatprep.subr.bf16.mxu0 %v3439_v53  ;;  %2529 = vmatprep.subr.bf16.mxu1 %v3441_v56 }
 0x2da   :  { %1241 = vmatprep.mubr.f32.mxu0 %v3269_v0  ;;  %1312 = vmatprep.mubr.f32.mxu1 %v3269_v0 }
 0x2dc   :  { %2499 = vmatpush1.bf16.msra.mxu0 %v3444_v60  ;;  %2531 = vmatpush1.bf16.msra.mxu1 %v3448_v63 }
 0x2dd   :  { %2501 = vmatprep.subr.bf16.mxu0 %v3452_v3  ;;  %2533 = vmatprep.subr.bf16.mxu1 %v3455_v6 }
 0x2e0   :  { %2503 = vmatpush1.bf16.msra.mxu0 %v3458_v10  ;;  %2535 = vmatpush1.bf16.msra.mxu1 %v3462_v13 }
 0x2e1   :  { %2505 = vmatprep.subr.bf16.mxu0 %v3466_v16  ;;  %2537 = vmatprep.subr.bf16.mxu1 %v3469_v19 }
 0x2e4   :  { %2507 = vmatpush1.bf16.msra.mxu0 %v3472_v23  ;;  %2539 = vmatpush1.bf16.msra.mxu1 %v3476_v26 }
 0x2e5   :  { %2509 = vmatprep.subr.bf16.mxu0 %v3480_v29  ;;  %2541 = vmatprep.subr.bf16.mxu1 %v3483_v32 }
 0x2e8   :  { %2511 = vmatpush1.bf16.msra.mxu0 %v3486_v36  ;;  %2543 = vmatpush1.bf16.msra.mxu1 %v3490_v40 }
 0x2e9   :  { %2513 = vmatprep.subr.bf16.mxu0 %v3494_v44  ;;  %2545 = vmatprep.subr.bf16.mxu1 %v3497_v48 }
 0x2ec   :  { %2515 = vmatpush1.bf16.msra.mxu0 %v3500_v54  ;;  %2547 = vmatpush1.bf16.msra.mxu1 %v3504_v58 }
 0x2ed   :  { %2517 = vmatprep.subr.bf16.mxu0 %v3508_v62  ;;  %2549 = vmatprep.subr.bf16.mxu1 %v3511_v4 }
 0x2f0   :  { %2519 = vmatpush1.bf16.msra.mxu0 %v3514_v9  ;;  %2551 = vmatpush1.bf16.msra.mxu1 %v3518_v14 }
 0x2f1   :  { %2521 = vmatprep.subr.bf16.mxu0 %v3522_v18  ;;  %2553 = vmatprep.subr.bf16.mxu1 %v3525_v22 }
 0x2f4   :  { %2523 = vmatpush1.bf16.msra.mxu0 %v3528_v25  ;;  %2555 = vmatpush1.bf16.msra.mxu1 %v3532_v27 }
 0x2f5   :  { %2557 = vmatprep.subr.bf16.mxu0 %v3429_v38  ;;  %2589 = vmatprep.subr.bf16.mxu1 %v3431_v41 }
 0x318   :  { %v801_v21 = vpop.xlane.xlu0 %800 }
 0x319   :  { %v802_v43 = vsub.f32 %v3633_v39, %v801_v21 }
 0x31b   :  { %v803_v46 = vmul.f32 1.442695, %v802_v43 }
 0x31d   :  { %2925 = vpow2.f32 %v803_v46 }
 0x327   :  { %v2926_v49 = vpop.eup %2925 }
 0x328   :  { %805 = vadd.xlane.f32.xlu0 %v2926_v49 }
 0x3aa   :  { %v1064_v51 = vpop.f32.mrb[4].mxu0  ;;  %v1135_v55 = vpop.f32.mrb[4].mxu1 }
 0x3ab   :  { %v2816_v57 = vadd.f32 %v1064_v51, %v3564_v28  ;;  %v1066_v59 = vpop.f32.mrb[5].mxu0  ;;  %v1137_v61 = vpop.f32.mrb[5].mxu1  ;;  %v2832_v7 = vadd.f32 %v1135_v55, %v3570_v45 }
 0x3ac   :  { %v2817_v1 = vadd.f32 %v1066_v59, %v3566_v30  ;;  %v2833_v11 = vadd.f32 %v1137_v61, %v3573_v52 }
 0x3ad   :  { %v2142_v2 = vmul.f32 -1.442695, %v2816_v57  ;;  %v2144_v12 = vmul.f32 -1.442695, %v2832_v7 }
 0x3ae   :  { %v2143_v5 = vmul.f32 -1.442695, %v2817_v1 }
 0x3af   :  { %2927 = vpow2.f32 %v2142_v2 }
 0x3b0   :  { %2929 = vpow2.f32 %v2143_v5 }
 0x3b5   :  { %v806_v8 = vpop.xlane.xlu0 %805 }
 0x3b6   :  { %2931 = vlog2.f32 %v806_v8 }
 0x3b7   :  { %2933 = vtanh.f32 %v2833_v11 }
 0x3b8   :  { %2935 = vpow2.f32 %v2144_v12 }
 0x3b9   :  { %v2928_v15 = vpop.eup %2927 }
 0x3ba   :  { %v1153_v17 = vadd.f32 1.0, %v2928_v15  ;;  %v2930_v20 = vpop.eup %2929 }
 0x3bb   :  { %v1154_v24 = vadd.f32 1.0, %v2930_v20 }
 0x3bc   :  { %2937 = vrcp.f32 %v1153_v17 }
 0x3bd   :  { %2939 = vrcp.f32 %v1154_v24 }
 0x3c0   :  { %v2932_v31 = vpop.eup %2931 }
 0x3c1   :  { %v808_v33 = vmul.f32 0.6931472, %v2932_v31  ;;  %v2934_v37 = vpop.eup %2933 }
 0x3c2   :  { %v2936_v42 = vpop.eup %2935 }
 0x3c3   :  { %v809_v34 = vadd.f32 %v808_v33, %v801_v21  ;;  %v1155_v55 = vadd.f32 1.0, %v2936_v42 }
 0x3c5   :  { %v810_v43 = vsub.f32 %v3633_v39, %v809_v34  ;;  %2941 = vrcp.f32 %v1155_v55 }
 0x3c6   :  { %v2938_v46 = vpop.eup %2937 }
 0x3c7   :  { %v1164_v49 = vmul.f32 %v2938_v46, %v2934_v37  ;;  %811 = vst [vmem:[#allocation15] sm:$0xff] %v810_v43  ;;  %v2940_v51 = vpop.eup %2939 }
 0x3c8   :  { %v1163_v57 = vmul.f32 %v2940_v51, %v3641_v35 }
 0x3ca   :  { %v3685_v59 = vadd.f32 %v1164_v49, %v1163_v57 }
 0x3cc   :  { %2943 = vtanh.f32 %v3685_v59 }
 0x3cf   :  { %v2942_v61 = vpop.eup %2941 }
 0x3d6   :  { %v2944_v1 = vpop.eup %2943 }
 0x3d7   :  { %v1167_v2 = vmul.f32 %v2944_v1, %v2942_v61 }
 0x3d9   :  { %1169 = vst [vmem:[#allocation14 + $0x10] sm:$0xff] %v1167_v2  ;;  %1242 = vmatmul.mubr.f32.vlgmr.msra.gmra.mrb[6].mxu0 %v1167_v2  ;;  %1313 = vmatmul.mubr.f32.vlgmr.msra.gmra.mrb[6].mxu1 %v1167_v2 }
 0x3da   :  { %2559 = vmatpush1.bf16.msra.mxu0 %v3433_v47  ;;  %2591 = vmatpush1.bf16.msra.mxu1 %v3436_v50 }
 0x3db   :  { %2561 = vmatprep.subr.bf16.mxu0 %v3439_v53  ;;  %2593 = vmatprep.subr.bf16.mxu1 %v3441_v56 }
 0x3dc   :  { %1420 = vmatprep.mubr.f32.mxu0 %v3269_v0  ;;  %1491 = vmatprep.mubr.f32.mxu1 %v3269_v0 }
 0x3de   :  { %2563 = vmatpush1.bf16.msra.mxu0 %v3444_v60  ;;  %2595 = vmatpush1.bf16.msra.mxu1 %v3448_v63 }
 0x3df   :  { %2565 = vmatprep.subr.bf16.mxu0 %v3452_v3  ;;  %2597 = vmatprep.subr.bf16.mxu1 %v3455_v6 }
 0x3e2   :  { %2567 = vmatpush1.bf16.msra.mxu0 %v3458_v10  ;;  %2599 = vmatpush1.bf16.msra.mxu1 %v3462_v13 }
 0x3e3   :  { %2569 = vmatprep.subr.bf16.mxu0 %v3466_v16  ;;  %2601 = vmatprep.subr.bf16.mxu1 %v3469_v19 }
 0x3e6   :  { %2571 = vmatpush1.bf16.msra.mxu0 %v3472_v23  ;;  %2603 = vmatpush1.bf16.msra.mxu1 %v3476_v26 }
 0x3e7   :  { %2573 = vmatprep.subr.bf16.mxu0 %v3480_v29  ;;  %2605 = vmatprep.subr.bf16.mxu1 %v3483_v32 }
 0x3ea   :  { %2575 = vmatpush1.bf16.msra.mxu0 %v3486_v36  ;;  %2607 = vmatpush1.bf16.msra.mxu1 %v3490_v40 }
 0x3eb   :  { %2577 = vmatprep.subr.bf16.mxu0 %v3494_v44  ;;  %2609 = vmatprep.subr.bf16.mxu1 %v3497_v48 }
 0x3ee   :  { %2579 = vmatpush1.bf16.msra.mxu0 %v3500_v54  ;;  %2611 = vmatpush1.bf16.msra.mxu1 %v3504_v58 }
 0x3ef   :  { %2581 = vmatprep.subr.bf16.mxu0 %v3508_v62  ;;  %2613 = vmatprep.subr.bf16.mxu1 %v3511_v4 }
 0x3f2   :  { %2583 = vmatpush1.bf16.msra.mxu0 %v3514_v9  ;;  %2615 = vmatpush1.bf16.msra.mxu1 %v3518_v14 }
 0x3f3   :  { %2585 = vmatprep.subr.bf16.mxu0 %v3522_v18  ;;  %2617 = vmatprep.subr.bf16.mxu1 %v3525_v22 }
 0x3f6   :  { %2587 = vmatpush1.bf16.msra.mxu0 %v3528_v25  ;;  %2619 = vmatpush1.bf16.msra.mxu1 %v3532_v27 }
 0x3f7   :  { %2621 = vmatprep.subr.bf16.mxu0 %v3429_v38  ;;  %2653 = vmatprep.subr.bf16.mxu1 %v3431_v41 }
 0x4ac   :  { %v1243_v39 = vpop.f32.mrb[6].mxu0  ;;  %v1314_v35 = vpop.f32.mrb[6].mxu1 }
 0x4ad   :  { %v2818_v21 = vadd.f32 %v1243_v39, %v3564_v28  ;;  %v1245_v5 = vpop.f32.mrb[7].mxu0  ;;  %v1316_v7 = vpop.f32.mrb[7].mxu1  ;;  %v2834_v15 = vadd.f32 %v1314_v35, %v3570_v45 }
 0x4ae   :  { %v2819_v8 = vadd.f32 %v1245_v5, %v3566_v30  ;;  %v2835_v17 = vadd.f32 %v1316_v7, %v3573_v52 }
 0x4af   :  { %v2145_v11 = vmul.f32 -1.442695, %v2818_v21  ;;  %v2147_v20 = vmul.f32 -1.442695, %v2834_v15 }
 0x4b0   :  { %v2146_v12 = vmul.f32 -1.442695, %v2819_v8 }
 0x4b1   :  { %2945 = vpow2.f32 %v2145_v11 }
 0x4b2   :  { %2947 = vpow2.f32 %v2146_v12 }
 0x4b3   :  { %2949 = vtanh.f32 %v2835_v17 }
 0x4b4   :  { %2951 = vpow2.f32 %v2147_v20 }
 0x4bb   :  { %v2946_v24 = vpop.eup %2945 }
 0x4bc   :  { %v1332_v31 = vadd.f32 1.0, %v2946_v24  ;;  %v2948_v33 = vpop.eup %2947 }
 0x4bd   :  { %v1333_v34 = vadd.f32 1.0, %v2948_v33  ;;  %v2950_v37 = vpop.eup %2949 }
 0x4be   :  { %2953 = vrcp.f32 %v1332_v31  ;;  %v2952_v42 = vpop.eup %2951 }
 0x4bf   :  { %2955 = vrcp.f32 %v1333_v34  ;;  %v1334_v51 = vadd.f32 1.0, %v2952_v42 }
 0x4c1   :  { %2957 = vrcp.f32 %v1334_v51 }
 0x4c8   :  { %v2954_v43 = vpop.eup %2953 }
 0x4c9   :  { %v1343_v46 = vmul.f32 %v2954_v43, %v2950_v37  ;;  %v2956_v49 = vpop.eup %2955 }
 0x4ca   :  { %v1342_v55 = vmul.f32 %v2956_v49, %v3685_v59 }
 0x4cb   :  { %v2958_v61 = vpop.eup %2957 }
 0x4cc   :  { %v3727_v57 = vadd.f32 %v1343_v46, %v1342_v55 }
 0x4ce   :  { %2959 = vtanh.f32 %v3727_v57 }
 0x4d8   :  { %v2960_v1 = vpop.eup %2959 }
 0x4d9   :  { %v1346_v2 = vmul.f32 %v2960_v1, %v2958_v61 }
 0x4db   :  { %1348 = vst [vmem:[#allocation14 + $0x18] sm:$0xff] %v1346_v2  ;;  %1421 = vmatmul.mubr.f32.vlgmr.msra.gmra.mrb[8].mxu0 %v1346_v2  ;;  %1492 = vmatmul.mubr.f32.vlgmr.msra.gmra.mrb[8].mxu1 %v1346_v2 }
 0x4dc   :  { %2623 = vmatpush1.bf16.msra.mxu0 %v3433_v47  ;;  %2655 = vmatpush1.bf16.msra.mxu1 %v3436_v50 }
 0x4dd   :  { %2625 = vmatprep.subr.bf16.mxu0 %v3439_v53  ;;  %2657 = vmatprep.subr.bf16.mxu1 %v3441_v56 }
 0x4de   :  { %1599 = vmatprep.mubr.f32.mxu0 %v3269_v0  ;;  %1670 = vmatprep.mubr.f32.mxu1 %v3269_v0 }
 0x4e0   :  { %2627 = vmatpush1.bf16.msra.mxu0 %v3444_v60  ;;  %2659 = vmatpush1.bf16.msra.mxu1 %v3448_v63 }
 0x4e1   :  { %2629 = vmatprep.subr.bf16.mxu0 %v3452_v3  ;;  %2661 = vmatprep.subr.bf16.mxu1 %v3455_v6 }
 0x4e4   :  { %2631 = vmatpush1.bf16.msra.mxu0 %v3458_v10  ;;  %2663 = vmatpush1.bf16.msra.mxu1 %v3462_v13 }
 0x4e5   :  { %2633 = vmatprep.subr.bf16.mxu0 %v3466_v16  ;;  %2665 = vmatprep.subr.bf16.mxu1 %v3469_v19 }
 0x4e8   :  { %2635 = vmatpush1.bf16.msra.mxu0 %v3472_v23  ;;  %2667 = vmatpush1.bf16.msra.mxu1 %v3476_v26 }
 0x4e9   :  { %2637 = vmatprep.subr.bf16.mxu0 %v3480_v29  ;;  %2669 = vmatprep.subr.bf16.mxu1 %v3483_v32 }
 0x4ec   :  { %2639 = vmatpush1.bf16.msra.mxu0 %v3486_v36  ;;  %2671 = vmatpush1.bf16.msra.mxu1 %v3490_v40 }
 0x4ed   :  { %2641 = vmatprep.subr.bf16.mxu0 %v3494_v44  ;;  %2673 = vmatprep.subr.bf16.mxu1 %v3497_v48 }
 0x4f0   :  { %2643 = vmatpush1.bf16.msra.mxu0 %v3500_v54  ;;  %2675 = vmatpush1.bf16.msra.mxu1 %v3504_v58 }
 0x4f1   :  { %2645 = vmatprep.subr.bf16.mxu0 %v3508_v62  ;;  %2677 = vmatprep.subr.bf16.mxu1 %v3511_v4 }
 0x4f4   :  { %2647 = vmatpush1.bf16.msra.mxu0 %v3514_v9  ;;  %2679 = vmatpush1.bf16.msra.mxu1 %v3518_v14 }
 0x4f5   :  { %2649 = vmatprep.subr.bf16.mxu0 %v3522_v18  ;;  %2681 = vmatprep.subr.bf16.mxu1 %v3525_v22 }
 0x4f8   :  { %2651 = vmatpush1.bf16.msra.mxu0 %v3528_v25  ;;  %2683 = vmatpush1.bf16.msra.mxu1 %v3532_v27 }
 0x4f9   :  { %2685 = vmatprep.subr.bf16.mxu0 %v3429_v38  ;;  %2717 = vmatprep.subr.bf16.mxu1 %v3431_v41 }
 0x5ae   :  { %v1422_v59 = vpop.f32.mrb[8].mxu0  ;;  %v1493_v39 = vpop.f32.mrb[8].mxu1 }
 0x5af   :  { %v2820_v35 = vadd.f32 %v1422_v59, %v3564_v28  ;;  %v1424_v21 = vpop.f32.mrb[9].mxu0  ;;  %v1495_v5 = vpop.f32.mrb[9].mxu1  ;;  %v2836_v12 = vadd.f32 %v1493_v39, %v3570_v45 }
 0x5b0   :  { %v2821_v7 = vadd.f32 %v1424_v21, %v3566_v30  ;;  %v2837_v15 = vadd.f32 %v1495_v5, %v3573_v52 }
 0x5b1   :  { %v2148_v8 = vmul.f32 -1.442695, %v2820_v35  ;;  %v2150_v17 = vmul.f32 -1.442695, %v2836_v12 }
 0x5b2   :  { %v2149_v11 = vmul.f32 -1.442695, %v2821_v7 }
 0x5b3   :  { %2961 = vpow2.f32 %v2148_v8 }
 0x5b4   :  { %2963 = vpow2.f32 %v2149_v11 }
 0x5b5   :  { %2965 = vtanh.f32 %v2837_v15 }
 0x5b6   :  { %2967 = vpow2.f32 %v2150_v17 }
 0x5bd   :  { %v2962_v20 = vpop.eup %2961 }
 0x5be   :  { %v1511_v24 = vadd.f32 1.0, %v2962_v20  ;;  %v2964_v31 = vpop.eup %2963 }
 0x5bf   :  { %v1512_v33 = vadd.f32 1.0, %v2964_v31  ;;  %v2966_v34 = vpop.eup %2965 }
 0x5c0   :  { %2969 = vrcp.f32 %v1511_v24  ;;  %v2968_v37 = vpop.eup %2967 }
 0x5c1   :  { %2971 = vrcp.f32 %v1512_v33  ;;  %v1513_v49 = vadd.f32 1.0, %v2968_v37 }
 0x5c3   :  { %2973 = vrcp.f32 %v1513_v49 }
 0x5ca   :  { %v2970_v42 = vpop.eup %2969 }
 0x5cb   :  { %v1522_v43 = vmul.f32 %v2970_v42, %v2966_v34  ;;  %v2972_v46 = vpop.eup %2971 }
 0x5cc   :  { %v1521_v51 = vmul.f32 %v2972_v46, %v3727_v57 }
 0x5cd   :  { %v2974_v61 = vpop.eup %2973 }
 0x5ce   :  { %v3769_v55 = vadd.f32 %v1522_v43, %v1521_v51 }
 0x5d0   :  { %2975 = vtanh.f32 %v3769_v55 }
 0x5da   :  { %v2976_v1 = vpop.eup %2975 }
 0x5db   :  { %v1525_v2 = vmul.f32 %v2976_v1, %v2974_v61 }
 0x5dd   :  { %1527 = vst [vmem:[#allocation14 + $0x20] sm:$0xff] %v1525_v2  ;;  %1600 = vmatmul.mubr.f32.vlgmr.msra.gmra.mrb[10].mxu0 %v1525_v2  ;;  %1671 = vmatmul.mubr.f32.vlgmr.msra.gmra.mrb[10].mxu1 %v1525_v2 }
 0x5de   :  { %2687 = vmatpush1.bf16.msra.mxu0 %v3433_v47  ;;  %2719 = vmatpush1.bf16.msra.mxu1 %v3436_v50 }
 0x5df   :  { %2689 = vmatprep.subr.bf16.mxu0 %v3439_v53  ;;  %2721 = vmatprep.subr.bf16.mxu1 %v3441_v56 }
 0x5e0   :  { %1778 = vmatprep.mubr.f32.mxu0 %v3269_v0  ;;  %1849 = vmatprep.mubr.f32.mxu1 %v3269_v0 }
 0x5e2   :  { %2691 = vmatpush1.bf16.msra.mxu0 %v3444_v60  ;;  %2723 = vmatpush1.bf16.msra.mxu1 %v3448_v63 }
 0x5e3   :  { %2693 = vmatprep.subr.bf16.mxu0 %v3452_v3  ;;  %2725 = vmatprep.subr.bf16.mxu1 %v3455_v6 }
 0x5e6   :  { %2695 = vmatpush1.bf16.msra.mxu0 %v3458_v10  ;;  %2727 = vmatpush1.bf16.msra.mxu1 %v3462_v13 }
 0x5e7   :  { %2697 = vmatprep.subr.bf16.mxu0 %v3466_v16  ;;  %2729 = vmatprep.subr.bf16.mxu1 %v3469_v19 }
 0x5ea   :  { %2699 = vmatpush1.bf16.msra.mxu0 %v3472_v23  ;;  %2731 = vmatpush1.bf16.msra.mxu1 %v3476_v26 }
 0x5eb   :  { %2701 = vmatprep.subr.bf16.mxu0 %v3480_v29  ;;  %2733 = vmatprep.subr.bf16.mxu1 %v3483_v32 }
 0x5ee   :  { %2703 = vmatpush1.bf16.msra.mxu0 %v3486_v36  ;;  %2735 = vmatpush1.bf16.msra.mxu1 %v3490_v40 }
 0x5ef   :  { %2705 = vmatprep.subr.bf16.mxu0 %v3494_v44  ;;  %2737 = vmatprep.subr.bf16.mxu1 %v3497_v48 }
 0x5f2   :  { %2707 = vmatpush1.bf16.msra.mxu0 %v3500_v54  ;;  %2739 = vmatpush1.bf16.msra.mxu1 %v3504_v58 }
 0x5f3   :  { %2709 = vmatprep.subr.bf16.mxu0 %v3508_v62  ;;  %2741 = vmatprep.subr.bf16.mxu1 %v3511_v4 }
 0x5f6   :  { %2711 = vmatpush1.bf16.msra.mxu0 %v3514_v9  ;;  %2743 = vmatpush1.bf16.msra.mxu1 %v3518_v14 }
 0x5f7   :  { %2713 = vmatprep.subr.bf16.mxu0 %v3522_v18  ;;  %2745 = vmatprep.subr.bf16.mxu1 %v3525_v22 }
 0x5fa   :  { %2715 = vmatpush1.bf16.msra.mxu0 %v3528_v25  ;;  %2747 = vmatpush1.bf16.msra.mxu1 %v3532_v27 }
 0x5fb   :  { %2749 = vmatprep.subr.bf16.mxu0 %v3429_v38  ;;  %2781 = vmatprep.subr.bf16.mxu1 %v3431_v41 }
 0x6b0   :  { %v1601_v57 = vpop.f32.mrb[10].mxu0  ;;  %v1672_v59 = vpop.f32.mrb[10].mxu1 }
 0x6b1   :  { %v2822_v39 = vadd.f32 %v1601_v57, %v3564_v28  ;;  %v1603_v35 = vpop.f32.mrb[11].mxu0  ;;  %v1674_v21 = vpop.f32.mrb[11].mxu1  ;;  %v2838_v11 = vadd.f32 %v1672_v59, %v3570_v45 }
 0x6b2   :  { %v2823_v5 = vadd.f32 %v1603_v35, %v3566_v30  ;;  %v2839_v12 = vadd.f32 %v1674_v21, %v3573_v52 }
 0x6b3   :  { %v2151_v7 = vmul.f32 -1.442695, %v2822_v39  ;;  %v2153_v15 = vmul.f32 -1.442695, %v2838_v11 }
 0x6b4   :  { %v2152_v8 = vmul.f32 -1.442695, %v2823_v5 }
 0x6b5   :  { %2977 = vpow2.f32 %v2151_v7 }
 0x6b6   :  { %2979 = vpow2.f32 %v2152_v8 }
 0x6b7   :  { %2981 = vtanh.f32 %v2839_v12 }
 0x6b8   :  { %2983 = vpow2.f32 %v2153_v15 }
 0x6bf   :  { %v2978_v38 = vpop.eup %2977 }
 0x6c0   :  { %v1690_v17 = vadd.f32 1.0, %v2978_v38  ;;  %v2980_v41 = vpop.eup %2979 }
 0x6c1   :  { %v1691_v20 = vadd.f32 1.0, %v2980_v41  ;;  %v2982_v24 = vpop.eup %2981 }
 0x6c2   :  { %2985 = vrcp.f32 %v1690_v17  ;;  %v2984_v31 = vpop.eup %2983 }
 0x6c3   :  { %2987 = vrcp.f32 %v1691_v20  ;;  %v1692_v42 = vadd.f32 1.0, %v2984_v31 }
 0x6c5   :  { %2989 = vrcp.f32 %v1692_v42 }
 0x6cc   :  { %v2986_v33 = vpop.eup %2985 }
 0x6cd   :  { %v1701_v34 = vmul.f32 %v2986_v33, %v2982_v24  ;;  %v2988_v37 = vpop.eup %2987 }
 0x6ce   :  { %v1700_v43 = vmul.f32 %v2988_v37, %v3769_v55 }
 0x6cf   :  { %v2990_v49 = vpop.eup %2989 }
 0x6d0   :  { %v3811_v46 = vadd.f32 %v1701_v34, %v1700_v43 }
 0x6d2   :  { %2991 = vtanh.f32 %v3811_v46 }
 0x6dc   :  { %v2992_v51 = vpop.eup %2991 }
 0x6dd   :  { %v1704_v61 = vmul.f32 %v2992_v51, %v2990_v49 }
 0x6df   :  { %1706 = vst [vmem:[#allocation14 + $0x28] sm:$0xff] %v1704_v61  ;;  %1779 = vmatmul.mubr.f32.vlgmr.msra.gmra.mrb[12].mxu0 %v1704_v61  ;;  %1850 = vmatmul.mubr.f32.vlgmr.msra.gmra.mrb[12].mxu1 %v1704_v61 }
 0x6e0   :  { %2751 = vmatpush1.bf16.msra.mxu0 %v3433_v47  ;;  %2783 = vmatpush1.bf16.msra.mxu1 %v3436_v50 }
 0x6e1   :  { %2753 = vmatprep.subr.bf16.mxu0 %v3439_v53  ;;  %2785 = vmatprep.subr.bf16.mxu1 %v3441_v56 }
 0x6e2   :  { %1957 = vmatprep.mubr.f32.mxu0 %v3269_v0  ;;  %2028 = vmatprep.mubr.f32.mxu1 %v3269_v0 }
 0x6e4   :  { %2755 = vmatpush1.bf16.msra.mxu0 %v3444_v60  ;;  %2787 = vmatpush1.bf16.msra.mxu1 %v3448_v63 }
 0x6e5   :  { %2757 = vmatprep.subr.bf16.mxu0 %v3452_v3  ;;  %2789 = vmatprep.subr.bf16.mxu1 %v3455_v6 }
 0x6e8   :  { %2759 = vmatpush1.bf16.msra.mxu0 %v3458_v10  ;;  %2791 = vmatpush1.bf16.msra.mxu1 %v3462_v13 }
 0x6e9   :  { %2761 = vmatprep.subr.bf16.mxu0 %v3466_v16  ;;  %2793 = vmatprep.subr.bf16.mxu1 %v3469_v19 }
 0x6ec   :  { %2763 = vmatpush1.bf16.msra.mxu0 %v3472_v23  ;;  %2795 = vmatpush1.bf16.msra.mxu1 %v3476_v26 }
 0x6ed   :  { %2765 = vmatprep.subr.bf16.mxu0 %v3480_v29  ;;  %2797 = vmatprep.subr.bf16.mxu1 %v3483_v32 }
 0x6f0   :  { %2767 = vmatpush1.bf16.msra.mxu0 %v3486_v36  ;;  %2799 = vmatpush1.bf16.msra.mxu1 %v3490_v40 }
 0x6f1   :  { %2769 = vmatprep.subr.bf16.mxu0 %v3494_v44  ;;  %2801 = vmatprep.subr.bf16.mxu1 %v3497_v48 }
 0x6f4   :  { %2771 = vmatpush1.bf16.msra.mxu0 %v3500_v54  ;;  %2803 = vmatpush1.bf16.msra.mxu1 %v3504_v58 }
 0x6f5   :  { %2773 = vmatprep.subr.bf16.mxu0 %v3508_v62  ;;  %2805 = vmatprep.subr.bf16.mxu1 %v3511_v4 }
 0x6f8   :  { %2775 = vmatpush1.bf16.msra.mxu0 %v3514_v9  ;;  %2807 = vmatpush1.bf16.msra.mxu1 %v3518_v14 }
 0x6f9   :  { %2777 = vmatprep.subr.bf16.mxu0 %v3522_v18  ;;  %2809 = vmatprep.subr.bf16.mxu1 %v3525_v22 }
 0x6fc   :  { %2779 = vmatpush1.bf16.msra.mxu0 %v3528_v25  ;;  %2811 = vmatpush1.bf16.msra.mxu1 %v3532_v27 }
 0x7b2   :  { %v1780_v0 = vpop.f32.mrb[12].mxu0  ;;  %v1851_v47 = vpop.f32.mrb[12].mxu1 }
 0x7b3   :  { %v2824_v50 = vadd.f32 %v1780_v0, %v3564_v28  ;;  %v1782_v53 = vpop.f32.mrb[13].mxu0  ;;  %v1853_v56 = vpop.f32.mrb[13].mxu1  ;;  %v2840_v6 = vadd.f32 %v1851_v47, %v3570_v45 }
 0x7b4   :  { %v2825_v60 = vadd.f32 %v1782_v53, %v3566_v30  ;;  %v2841_v10 = vadd.f32 %v1853_v56, %v3573_v52 }
 0x7b5   :  { %v2154_v63 = vmul.f32 -1.442695, %v2824_v50  ;;  %v2156_v13 = vmul.f32 -1.442695, %v2840_v6 }
 0x7b6   :  { %v2155_v3 = vmul.f32 -1.442695, %v2825_v60 }
 0x7b7   :  { %2993 = vpow2.f32 %v2154_v63 }
 0x7b8   :  { %2995 = vpow2.f32 %v2155_v3 }
 0x7b9   :  { %2997 = vtanh.f32 %v2841_v10 }
 0x7ba   :  { %2999 = vpow2.f32 %v2156_v13 }
 0x7c1   :  { %v2994_v16 = vpop.eup %2993 }
 0x7c2   :  { %v1869_v19 = vadd.f32 1.0, %v2994_v16  ;;  %v2996_v23 = vpop.eup %2995 }
 0x7c3   :  { %v1870_v26 = vadd.f32 1.0, %v2996_v23  ;;  %v2998_v29 = vpop.eup %2997 }
 0x7c4   :  { %3001 = vrcp.f32 %v1869_v19  ;;  %v3000_v32 = vpop.eup %2999 }
 0x7c5   :  { %3003 = vrcp.f32 %v1870_v26  ;;  %v1871_v48 = vadd.f32 1.0, %v3000_v32 }
 0x7c7   :  { %3005 = vrcp.f32 %v1871_v48 }
 0x7ce   :  { %v3002_v36 = vpop.eup %3001 }
 0x7cf   :  { %v1880_v40 = vmul.f32 %v3002_v36, %v2998_v29  ;;  %v3004_v44 = vpop.eup %3003 }
 0x7d0   :  { %v1879_v54 = vmul.f32 %v3004_v44, %v3811_v46 }
 0x7d1   :  { %v3006_v62 = vpop.eup %3005 }
 0x7d2   :  { %v1881_v58 = vadd.f32 %v1880_v40, %v1879_v54 }
 0x7d4   :  { %3007 = vtanh.f32 %v1881_v58 }
 0x7de   :  { %v3008_v4 = vpop.eup %3007 }
 0x7df   :  { %v1883_v9 = vmul.f32 %v3008_v4, %v3006_v62 }
 0x7e1   :  { %1885 = vst [vmem:[#allocation14 + $0x30] sm:$0xff] %v1883_v9  ;;  %1958 = vmatmul.mubr.f32.vlgmr.msra.gmra.mrb[14].mxu0 %v1883_v9  ;;  %2029 = vmatmul.mubr.f32.vlgmr.msra.gmra.mrb[14].mxu1 %v1883_v9 }
 0x7e2   :  { %3168 = shalt.err (!%p3165_p10)
}
 0x7e3   :  { %s3169_s23 = scalar_lea.hbm %s3915_s9, 128 }
 0x7e4   :  { %p3170_p11 = scmp.ne.s32.totalorder %s3915_s9, %s3169_s23  ;;  %p3173_p12 = scmp.lt.u32.totalorder %s3169_s23, %s3915_s9 }
 0x7e6   :  { %p3175_p13 = pnand %p3173_p12, %p3170_p11 }
 0x7e8   :  { %3178 = shalt.err (!%p3175_p13)
}
 0x7e9   :  { %2088 = dma.vmem_to_hbm [thread:$0]  %s2086_s15, 128, %s3915_s9, [#allocation16]  }
 0x7ea   :  { %s3273_s9 = smov [#allocation18]  }
 0x7eb   :  { %s2105_s29 = sshll.u32 %s3273_s9, 4  ;;  %s2106_s29 = int_to_ptr.vmem [resolvable:$true] %s2105_s29 }
 0x7ec   :  { %s3179_s30 = scalar_lea.vmem %s2106_s29, 128  ;;  %p3184_p1 = scmp.lt.s32.totalorder %s2106_s29, %s2106_s29 }
 0x7ed   :  { %p3180_p0 = scmp.ne.s32.totalorder %s2106_s29, %s3179_s30  ;;  %p3185_p2 = scmp.lt.s32.totalorder %s3179_s30, %s3179_s30 }
 0x7ef   :  { %p3186_p3 = por %p3185_p2, %p3184_p1 }
 0x7f1   :  { %p3187_p4 = pnand %p3186_p3, %p3180_p0 }
 0x8b4   :  { %v1959_v14 = vpop.f32.mrb[14].mxu0  ;;  %v2030_v18 = vpop.f32.mrb[14].mxu1 }
 0x8b5   :  { %v2826_v22 = vadd.f32 %v1959_v14, %v3564_v28  ;;  %v1961_v25 = vpop.f32.mrb[15].mxu0  ;;  %v2032_v27 = vpop.f32.mrb[15].mxu1  ;;  %v2842_v57 = vadd.f32 %v2030_v18, %v3570_v45 }
 0x8b6   :  { %v2827_v55 = vadd.f32 %v1961_v25, %v3566_v30  ;;  %v2843_v59 = vadd.f32 %v2032_v27, %v3573_v52 }
 0x8b7   :  { %v2157_v1 = vmul.f32 -1.442695, %v2826_v22  ;;  %v2159_v39 = vmul.f32 -1.442695, %v2842_v57 }
 0x8b8   :  { %v2158_v2 = vmul.f32 -1.442695, %v2827_v55 }
 0x8b9   :  { %3009 = vpow2.f32 %v2157_v1 }
 0x8ba   :  { %3011 = vpow2.f32 %v2158_v2 }
 0x8bb   :  { %3013 = vtanh.f32 %v2843_v59 }
 0x8bc   :  { %3015 = vpow2.f32 %v2159_v39 }
 0x8c3   :  { %v3010_v35 = vpop.eup %3009 }
 0x8c4   :  { %v2048_v21 = vadd.f32 1.0, %v3010_v35  ;;  %v3012_v5 = vpop.eup %3011 }
 0x8c5   :  { %v2049_v28 = vadd.f32 1.0, %v3012_v5  ;;  %v3014_v7 = vpop.eup %3013 }
 0x8c6   :  { %3017 = vrcp.f32 %v2048_v21  ;;  %v3016_v8 = vpop.eup %3015 }
 0x8c7   :  { %3019 = vrcp.f32 %v2049_v28  ;;  %v2050_v15 = vadd.f32 1.0, %v3016_v8 }
 0x8c9   :  { %3021 = vrcp.f32 %v2050_v15 }
 0x8d0   :  { %v3018_v30 = vpop.eup %3017 }
 0x8d1   :  { %v2059_v11 = vmul.f32 %v3018_v30, %v3014_v7  ;;  %v3020_v12 = vpop.eup %3019 }
 0x8d2   :  { %v2058_v45 = vmul.f32 %v3020_v12, %v1881_v58 }
 0x8d4   :  { %v2060_v38 = vadd.f32 %v2059_v11, %v2058_v45 }
 0x8d6   :  { %3023 = vtanh.f32 %v2060_v38  ;;  %2066 = vst [vmem:[#allocation18] sm:$0xff] %v2060_v38 }
 0x8d7   :  { %3190 = shalt.err (!%p3187_p4)
}
 0x8d8   :  { %s3191_s12 = scalar_lea.hbm %s3917_s11, 128 }
 0x8d9   :  { %p3192_p5 = scmp.ne.s32.totalorder %s3917_s11, %s3191_s12  ;;  %p3195_p6 = scmp.lt.u32.totalorder %s3191_s12, %s3917_s11 }
 0x8db   :  { %p3197_p7 = pnand %p3195_p6, %p3192_p5 }
 0x8dd   :  { %3200 = shalt.err (!%p3197_p7)
}
 0x8de   :  { %2108 = dma.vmem_to_hbm [thread:$0]  %s2106_s29, 128, %s3917_s11, [#allocation19]   ;;  %v3022_v52 = vpop.eup %3021 }
 0x8df   :  { %s3274_s5 = smov [#allocation14]   ;;  %s3275_s7 = smov [#allocation17]  }
 0x8e0   :  { %s2072_s22 = sshll.u32 %s3274_s5, 4  ;;  %s2095_s15 = sshll.u32 %s3275_s7, 4  ;;  %v3024_v17 = vpop.eup %3023  ;;  %s2073_s22 = int_to_ptr.vmem [resolvable:$true] %s2072_s22  ;;  %s2096_s15 = int_to_ptr.vmem [resolvable:$true] %s2095_s15 }
 0x8e1   :  { %v2062_v41 = vmul.f32 %v3024_v17, %v3022_v52  ;;  %s3201_s16 = scalar_lea.vmem %s2073_s22, 1024  ;;  %p3206_p9 = scmp.lt.s32.totalorder %s2073_s22, %s2073_s22 }
 0x8e2   :  { %p3202_p8 = scmp.ne.s32.totalorder %s2073_s22, %s3201_s16  ;;  %p3207_p10 = scmp.lt.s32.totalorder %s3201_s16, %s3201_s16 }
 0x8e3   :  { %2064 = vst [vmem:[#allocation14 + $0x38] sm:$0xff] %v2062_v41  ;;  %2065 = vst [vmem:[#allocation17] sm:$0xff] %v2062_v41 }
 0x8e4   :  { %p3208_p11 = por %p3207_p10, %p3206_p9 }
 0x8e6   :  { %p3209_p12 = pnand %p3208_p11, %p3202_p8 }
 0x8e8   :  { %3212 = shalt.err (!%p3209_p12)
}
 0x8e9   :  { %s3213_s21 = scalar_lea.hbm %s3914_s8, 1024 }
 0x8ea   :  { %p3214_p13 = scmp.ne.s32.totalorder %s3914_s8, %s3213_s21  ;;  %p3217_p0 = scmp.lt.u32.totalorder %s3213_s21, %s3914_s8 }
 0x8ec   :  { %p3219_p1 = pnand %p3217_p0, %p3214_p13 }
 0x8ee   :  { %3222 = shalt.err (!%p3219_p1)
}
 0x8ef   :  { %2078 = dma.vmem_to_hbm [thread:$0]  %s2073_s22, 1024, %s3914_s8, [#allocation5], %s3264_s3, %s3264_s3, %s3265_s20  }
 0x8f0   :  { %s3223_s28 = scalar_lea.vmem %s2096_s15, 128  ;;  %p3228_p3 = scmp.lt.s32.totalorder %s2096_s15, %s2096_s15 }
 0x8f1   :  { %p3224_p2 = scmp.ne.s32.totalorder %s2096_s15, %s3223_s28  ;;  %p3229_p4 = scmp.lt.s32.totalorder %s3223_s28, %s3223_s28 }
 0x8f3   :  { %p3230_p5 = por %p3229_p4, %p3228_p3 }
 0x8f5   :  { %p3231_p6 = pnand %p3230_p5, %p3224_p2 }
 0x8f7   :  { %3234 = shalt.err (!%p3231_p6)
}
 0x8f8   :  { %s3235_s30 = scalar_lea.hbm %s3916_s10, 128 }
 0x8f9   :  { %p3236_p7 = scmp.ne.s32.totalorder %s3916_s10, %s3235_s30  ;;  %p3239_p8 = scmp.lt.u32.totalorder %s3235_s30, %s3916_s10 }
 0x8fb   :  { %p3241_p9 = pnand %p3239_p8, %p3236_p7 }
 0x8fd   :  { %3244 = shalt.err (!%p3241_p9)
}
 0x8fe   :  { %2098 = dma.vmem_to_hbm [thread:$0]  %s2096_s15, 128, %s3916_s10, [#allocation16]  }
 0x8ff   :  { %3253 = dma.done.wait [#allocation5], 1024  }
 0x900   :  { %3254 = vsyncadd [#allocation5], 4294966272 }
 0x901   :  { %3255 = dma.done.wait [#allocation16], 256  }
 0x902   :  { %3256 = vsyncadd [#allocation16], 4294967040 }
 0x903   :  { %3257 = dma.done.wait [#allocation19], 128  }
 0x904   :  { %3258 = vsyncadd [#allocation19], 4294967168 }
 0x905   :  { %2121 = vsyncpa [#allocation4], 1 }
 0x906   :  { %2122 = vsyncpa [#allocation7], 1 }
 0x907   :  { %2123 = vsyncpa [#allocation10], 1 }
 0x908   :  { %2124 = vsyncpa [#allocation13], 1 }
 0x909   :  { %2125 = vsyncpa [#allocation5], 1 }
 0x90a   :  { %2126 = vsyncpa [#allocation16], 1 }
 0x90b   :  { %2127 = vsyncpa [#allocation19], 1 }

</bundles_post_ra>
